<compile_context>
chip_gen: v6e
topology: v6e:2x2x1
jax: 0.10.0
libtpu: 0.0.40
codegen_flags: <defaults>
</compile_context>

<pallas_src>
import math

import jax
import jax.numpy as jnp
from jax import lax
from jax.experimental import pallas as pl
from jax.experimental.pallas import tpu as pltpu

# ----------------------- tiny synthetic BERT config -----------------------
VOCAB = 100
VOCAB_PAD = 128          # one-hot gather / embedding table padded to 128 lanes
MAX_POS = 16
TYPE_VOCAB = 2
H = 32                   # hidden_size
NUM_HEADS = 2
HEAD_DIM = H // NUM_HEADS
INTER = 64               # intermediate_size
NUM_LAYERS = 2
N_CLASSES = 3
CLS_PAD = 128            # lane-dense classifier / output width
LN_EPS = 1e-12


# ------------------------------ shared math helpers ------------------------------

def _layernorm(x, g, b):
    mu = jnp.mean(x, axis=-1, keepdims=True)
    var = jnp.mean(jnp.square(x - mu), axis=-1, keepdims=True)
    return (x - mu) * lax.rsqrt(var + LN_EPS) * g + b


def _gelu(x):
    # TODO(synk): HF BERT default is exact erf GELU; tanh approximation kept since erf
    # lowering in Mosaic is not guaranteed (difference ~1e-3).
    c = math.sqrt(2.0 / math.pi)
    return 0.5 * x * (1.0 + jnp.tanh(c * (x + 0.044715 * x * x * x)))


# ------------------------------- fused kernel -------------------------------

def _bert_kernel(ids_ref, mask_ref, wemb_ref, pt_ref, embln_ref,
                 wqkv_ref, bqkv_ref, wo_ref, vecs_ref,
                 wi_ref, bi_ref, wff_ref,
                 pw_ref, pb_ref, cw_ref, cb_ref,
                 probs_ref):
    seq = ids_ref.shape[0]
    scale = 1.0 / math.sqrt(HEAD_DIM)

    # ---- embeddings: exact one-hot gather on the MXU + pos/type add + LayerNorm ----
    tok = ids_ref[...]                                              # [S, 1] int32
    onehot = (lax.broadcasted_iota(jnp.int32, (seq, VOCAB_PAD), 1)
              == tok).astype(jnp.float32)                           # [S, VOCAB_PAD]
    we = jnp.dot(onehot, wemb_ref[...], preferred_element_type=jnp.float32)
    eln = embln_ref[...]                                            # [2, H]
    x = _layernorm(we + pt_ref[...], eln[0:1, :], eln[1:2, :])      # [S, H] f32

    mask_b = mask_ref[...][None, :, :]                              # [1, 1, S], hoisted

    # ---- encoder layers: statically unrolled, weights indexed on the layer axis ----
    for l in range(NUM_LAYERS):
        xb = x.astype(jnp.bfloat16)                                 # cast once per layer

        # fused QKV projection (head-major columns), split once into [nH, S, dH]
        qkv = jnp.dot(xb, wqkv_ref[l],
                      preferred_element_type=jnp.float32) + bqkv_ref[l]   # [S, 3H] f32
        qkvb = qkv.astype(jnp.bfloat16)
        qkv_h = jnp.stack(
            [qkvb[:, h * 3 * HEAD_DIM:(h + 1) * 3 * HEAD_DIM] for h in range(NUM_HEADS)],
            axis=0)                                                 # [nH, S, 3*dH]
        q = qkv_h[:, :, :HEAD_DIM]
        k = qkv_h[:, :, HEAD_DIM:2 * HEAD_DIM]
        v = qkv_h[:, :, 2 * HEAD_DIM:]

        # batched attention over heads: one score einsum, one softmax chain, one ctx einsum
        s = jnp.einsum('hqd,hkd->hqk', q, k,
                       preferred_element_type=jnp.float32) * scale + mask_b   # [nH, S, S]
        m = jnp.max(s, axis=-1, keepdims=True)
        p = jnp.exp(s - m)
        p = p / jnp.sum(p, axis=-1, keepdims=True)
        ctx = jnp.einsum('hqk,hkd->hqd', p.astype(jnp.bfloat16), v,
                         preferred_element_type=jnp.float32)        # [nH, S, dH]

        # merge-heads fused into a batched output projection, summed over heads
        attn_h = jnp.einsum('hqd,hdo->hqo', ctx.astype(jnp.bfloat16), wo_ref[l],
                            preferred_element_type=jnp.float32)     # [nH, S, H]
        vecs = vecs_ref[l]                                          # [6, H]
        attn = attn_h[0]
        for h in range(1, NUM_HEADS):
            attn = attn + attn_h[h]
        attn = attn + vecs[0:1, :]                                  # + ao_b

        x = _layernorm(attn + x, vecs[1:2, :], vecs[2:3, :])

        # feed-forward: Linear + GELU + Linear + residual + LayerNorm
        inter = jnp.dot(x.astype(jnp.bfloat16), wi_ref[l],
                        preferred_element_type=jnp.float32) + bi_ref[l]      # [S, INTER]
        inter = _gelu(inter)
        ffn = jnp.dot(inter.astype(jnp.bfloat16), wff_ref[l],
                      preferred_element_type=jnp.float32) + vecs[3:4, :]
        x = _layernorm(ffn + x, vecs[4:5, :], vecs[5:6, :])

    # ---- pooler(CLS = row 0) + dropout(identity) + classifier + softmax (lane-dense) ----
    cls = x[0:1, :]                                                 # [1, H]
    pooled = jnp.tanh(jnp.dot(cls.astype(jnp.bfloat16), pw_ref[...],
                              preferred_element_type=jnp.float32) + pb_ref[...])
    # TODO(synk): nn.Dropout(p=0.3) is identity in eval/inference mode; omitted.
    logits = jnp.dot(pooled.astype(jnp.bfloat16), cw_ref[...],
                     preferred_element_type=jnp.float32) + cb_ref[...]       # [1, CLS_PAD]
    lanes = lax.broadcasted_iota(jnp.int32, (1, CLS_PAD), 1)
    logits = jnp.where(lanes < N_CLASSES, logits, -1e30)
    m = jnp.max(logits, axis=-1, keepdims=True)
    e = jnp.exp(logits - m)
    probs_ref[...] = e / jnp.sum(e, axis=-1, keepdims=True)


# ------------------------- parameter init & packing -------------------------

def init_params(key):
    keys = iter(jax.random.split(key, 10 + 20 * NUM_LAYERS))

    def nrm(shape, scale=0.02):
        return scale * jax.random.normal(next(keys), shape, dtype=jnp.float32)

    params = {
        'word_emb': nrm((VOCAB, H)),
        'pos_emb': nrm((MAX_POS, H)),
        'type_emb': nrm((TYPE_VOCAB, H)),
        'emb_ln_g': 1.0 + nrm((1, H), 0.1),
        'emb_ln_b': nrm((1, H), 0.1),
        'pool_w': nrm((H, H)),
        'pool_b': nrm((1, H)),
        'cls_w': nrm((H, N_CLASSES)),
        'cls_b': nrm((1, N_CLASSES)),
        'layers': [],
    }
    for _ in range(NUM_LAYERS):
        params['layers'].append(dict(
            q_w=nrm((H, H)), q_b=nrm((1, H)),
            k_w=nrm((H, H)), k_b=nrm((1, H)),
            v_w=nrm((H, H)), v_b=nrm((1, H)),
            ao_w=nrm((H, H)), ao_b=nrm((1, H)),
            attn_ln_g=1.0 + nrm((1, H), 0.1), attn_ln_b=nrm((1, H), 0.1),
            i_w=nrm((H, INTER)), i_b=nrm((1, INTER)),
            o_w=nrm((INTER, H)), o_b=nrm((1, H)),
            ffn_ln_g=1.0 + nrm((1, H), 0.1), ffn_ln_b=nrm((1, H), 0.1),
        ))
    return params


def pack_params(params):
    """Stack per-layer weights on a leading layer axis, fuse QKV with head-major
    columns, stack the attention out-proj per head, consolidate bias/LN vectors into
    one slab, zero-pad embedding table and classifier to 128 lanes, and cast matmul
    weights to bf16 (biases / LN params stay f32)."""
    wqkv, bqkv, wo, vecs, wi, bi, wff = [], [], [], [], [], [], []
    for lp in params['layers']:
        w_cols, b_cols = [], []
        for h in range(NUM_HEADS):
            c = slice(h * HEAD_DIM, (h + 1) * HEAD_DIM)
            w_cols += [lp['q_w'][:, c], lp['k_w'][:, c], lp['v_w'][:, c]]
            b_cols += [lp['q_b'][:, c], lp['k_b'][:, c], lp['v_b'][:, c]]
        wqkv.append(jnp.concatenate(w_cols, axis=1))                 # [H, 3H] head-major
        bqkv.append(jnp.concatenate(b_cols, axis=1))                 # [1, 3H]
        wo.append(jnp.stack([lp['ao_w'][h * HEAD_DIM:(h + 1) * HEAD_DIM, :]
                             for h in range(NUM_HEADS)], axis=0))    # [nH, dH, H]
        vecs.append(jnp.concatenate(
            [lp['ao_b'], lp['attn_ln_g'], lp['attn_ln_b'],
             lp['o_b'], lp['ffn_ln_g'], lp['ffn_ln_b']], axis=0))    # [6, H]
        wi.append(lp['i_w'])
        bi.append(lp['i_b'])
        wff.append(lp['o_w'])

    wemb = jnp.zeros((VOCAB_PAD, H), jnp.float32).at[:VOCAB, :].set(params['word_emb'])
    cls_w = jnp.zeros((H, CLS_PAD), jnp.float32).at[:, :N_CLASSES].set(params['cls_w'])
    cls_b = jnp.zeros((1, CLS_PAD), jnp.float32).at[:, :N_CLASSES].set(params['cls_b'])

    return dict(
        wemb=wemb,                                                   # f32 (exact gather)
        embln=jnp.concatenate([params['emb_ln_g'], params['emb_ln_b']], axis=0),  # [2, H]
        wqkv=jnp.stack(wqkv).astype(jnp.bfloat16),
        bqkv=jnp.stack(bqkv),
        wo=jnp.stack(wo).astype(jnp.bfloat16),
        vecs=jnp.stack(vecs),
        wi=jnp.stack(wi).astype(jnp.bfloat16),
        bi=jnp.stack(bi),
        wff=jnp.stack(wff).astype(jnp.bfloat16),
        pool_w=params['pool_w'].astype(jnp.bfloat16), pool_b=params['pool_b'],
        cls_w=cls_w.astype(jnp.bfloat16), cls_b=cls_b,
        pos_emb=params['pos_emb'], type_emb=params['type_emb'],
    )


# -------------------------------- forward -----------------------------------

def enterpreneur_classifier_forward(packed, input_ids, attention_mask):
    B, S = input_ids.shape
    assert S <= MAX_POS, "sequence length exceeds position-embedding table"

    ids3 = input_ids.astype(jnp.int32).reshape(B, S, 1)
    mask3 = ((1.0 - attention_mask.astype(jnp.float32)) * -10000.0).reshape(B, 1, S)
    pt = packed['pos_emb'][:S] + packed['type_emb'][0][None, :]      # [S, H] pos + type(0)

    def full(arr):
        return pl.BlockSpec(arr.shape, lambda b, _nd=arr.ndim: (0,) * _nd)

    in_specs = [
        pl.BlockSpec((None, S, 1), lambda b: (b, 0, 0)),             # ids   -> [S, 1]
        pl.BlockSpec((None, 1, S), lambda b: (b, 0, 0)),             # mask  -> [1, S]
        full(packed['wemb']), full(pt), full(packed['embln']),
        full(packed['wqkv']), full(packed['bqkv']), full(packed['wo']),
        full(packed['vecs']), full(packed['wi']), full(packed['bi']), full(packed['wff']),
        full(packed['pool_w']), full(packed['pool_b']),
        full(packed['cls_w']), full(packed['cls_b']),
    ]

    probs_pad = pl.pallas_call(
        _bert_kernel,
        out_shape=jax.ShapeDtypeStruct((B, 1, CLS_PAD), jnp.float32),
        grid=(B,),                                                   # parallel over batch
        in_specs=in_specs,
        out_specs=pl.BlockSpec((None, 1, CLS_PAD), lambda b: (b, 0, 0)),
        compiler_params=pltpu.CompilerParams(
            dimension_semantics=("parallel",),                       # v7x: shard across TCs
        ),
    )(ids3, mask3, packed['wemb'], pt, packed['embln'],
      packed['wqkv'], packed['bqkv'], packed['wo'], packed['vecs'],
      packed['wi'], packed['bi'], packed['wff'],
      packed['pool_w'], packed['pool_b'], packed['cls_w'], packed['cls_b'])

    return probs_pad[:, 0, :N_CLASSES]


# ----------------------- pure-JAX f32 reference (for checking) -----------------------

def reference_forward(params, input_ids, attention_mask):
    B, S = input_ids.shape
    x = (params['word_emb'][input_ids]
         + params['pos_emb'][:S][None, :, :]
         + params['type_emb'][0][None, None, :])
    x = _layernorm(x, params['emb_ln_g'], params['emb_ln_b'])
    mask = (1.0 - attention_mask.astype(jnp.float32))[:, None, None, :] * -10000.0

    for lp in params['layers']:
        def split(t):
            return t.reshape(B, S, NUM_HEADS, HEAD_DIM).transpose(0, 2, 1, 3)
        q = split(x @ lp['q_w'] + lp['q_b'])
        k = split(x @ lp['k_w'] + lp['k_b'])
        v = split(x @ lp['v_w'] + lp['v_b'])
        s = jnp.einsum('bhqd,bhkd->bhqk', q, k) / math.sqrt(HEAD_DIM) + mask
        p = jax.nn.softmax(s, axis=-1)
        ctx = jnp.einsum('bhqk,bhkd->bhqd', p, v).transpose(0, 2, 1, 3).reshape(B, S, H)
        x = _layernorm(ctx @ lp['ao_w'] + lp['ao_b'] + x, lp['attn_ln_g'], lp['attn_ln_b'])
        ffn = _gelu(x @ lp['i_w'] + lp['i_b']) @ lp['o_w'] + lp['o_b']
        x = _layernorm(ffn + x, lp['ffn_ln_g'], lp['ffn_ln_b'])

    pooled = jnp.tanh(x[:, 0, :] @ params['pool_w'] + params['pool_b'])
    logits = pooled @ params['cls_w'] + params['cls_b']
    return jax.nn.softmax(logits, axis=-1)


# --------------------------------- main --------------------------------------

if __name__ == "__main__":
    key = jax.random.PRNGKey(0)
    pkey, ikey = jax.random.split(key)

    params = init_params(pkey)
    packed = pack_params(params)

    B, S = 2, 8
    input_ids = jax.random.randint(ikey, (B, S), 0, VOCAB, dtype=jnp.int32)
    attention_mask = jnp.ones((B, S), dtype=jnp.int32).at[1, 6:].set(0)  # mask 2 tail tokens

    fwd = jax.jit(enterpreneur_classifier_forward)
    probs = jax.block_until_ready(fwd(packed, input_ids, attention_mask))

    assert probs.shape == (B, N_CLASSES)
    assert bool(jnp.all(jnp.isfinite(probs)))
    assert bool(jnp.all(jnp.abs(jnp.sum(probs, axis=1) - 1.0) < 1e-5))

    ref = reference_forward(params, input_ids, attention_mask)
    max_err = float(jnp.max(jnp.abs(probs - ref)))
    assert max_err < 2e-2, f"kernel deviates from pure-JAX reference by {max_err}"

    print("KERNEL_OK")
</pallas_src>

<mosaic_0001>
module attributes {stable_mosaic.version = 11 : i64} {
  func.func @_bert_kernel(%arg0: i32, %arg1: memref<1x8x1xi32, #tpu.memory_space<vmem>>, %arg2: memref<1x1x8xf32, #tpu.memory_space<vmem>>, %arg3: memref<128x32xf32, #tpu.memory_space<vmem>>, %arg4: memref<8x32xf32, #tpu.memory_space<vmem>>, %arg5: memref<2x32xf32, #tpu.memory_space<vmem>>, %arg6: memref<2x32x96xbf16, #tpu.memory_space<vmem>>, %arg7: memref<2x1x96xf32, #tpu.memory_space<vmem>>, %arg8: memref<2x2x16x32xbf16, #tpu.memory_space<vmem>>, %arg9: memref<2x6x32xf32, #tpu.memory_space<vmem>>, %arg10: memref<2x32x64xbf16, #tpu.memory_space<vmem>>, %arg11: memref<2x1x64xf32, #tpu.memory_space<vmem>>, %arg12: memref<2x64x32xbf16, #tpu.memory_space<vmem>>, %arg13: memref<32x32xbf16, #tpu.memory_space<vmem>>, %arg14: memref<1x32xf32, #tpu.memory_space<vmem>>, %arg15: memref<32x128xbf16, #tpu.memory_space<vmem>>, %arg16: memref<1x128xf32, #tpu.memory_space<vmem>>, %arg17: memref<1x1x128xf32, #tpu.memory_space<vmem>>) attributes {dimension_semantics = [#tpu.dimension_semantics<parallel>], iteration_bounds = array<i64: 2>, scalar_prefetch = 0 : i64, scratch_operands = 0 : i64, tpu.core_type = #tpu.core_type<tc>, window_params = [{transform_indices = @transform_0, window_bounds = array<i64: 1, 8, 1>}, {transform_indices = @transform_1, window_bounds = array<i64: 1, 1, 8>}, {pipeline_mode = #tpu.pipeline_mode<synchronous>, transform_indices = @transform_2, window_bounds = array<i64: 128, 32>}, {pipeline_mode = #tpu.pipeline_mode<synchronous>, transform_indices = @transform_3, window_bounds = array<i64: 8, 32>}, {pipeline_mode = #tpu.pipeline_mode<synchronous>, transform_indices = @transform_4, window_bounds = array<i64: 2, 32>}, {pipeline_mode = #tpu.pipeline_mode<synchronous>, transform_indices = @transform_5, window_bounds = array<i64: 2, 32, 96>}, {pipeline_mode = #tpu.pipeline_mode<synchronous>, transform_indices = @transform_6, window_bounds = array<i64: 2, 1, 96>}, {pipeline_mode = #tpu.pipeline_mode<synchronous>, transform_indices = @transform_7, window_bounds = array<i64: 2, 2, 16, 32>}, {pipeline_mode = #tpu.pipeline_mode<synchronous>, transform_indices = @transform_8, window_bounds = array<i64: 2, 6, 32>}, {pipeline_mode = #tpu.pipeline_mode<synchronous>, transform_indices = @transform_9, window_bounds = array<i64: 2, 32, 64>}, {pipeline_mode = #tpu.pipeline_mode<synchronous>, transform_indices = @transform_10, window_bounds = array<i64: 2, 1, 64>}, {pipeline_mode = #tpu.pipeline_mode<synchronous>, transform_indices = @transform_11, window_bounds = array<i64: 2, 64, 32>}, {pipeline_mode = #tpu.pipeline_mode<synchronous>, transform_indices = @transform_12, window_bounds = array<i64: 32, 32>}, {pipeline_mode = #tpu.pipeline_mode<synchronous>, transform_indices = @transform_13, window_bounds = array<i64: 1, 32>}, {pipeline_mode = #tpu.pipeline_mode<synchronous>, transform_indices = @transform_14, window_bounds = array<i64: 32, 128>}, {pipeline_mode = #tpu.pipeline_mode<synchronous>, transform_indices = @transform_15, window_bounds = array<i64: 1, 128>}, {transform_indices = @transform_16, window_bounds = array<i64: 1, 1, 128>}]} {
    %c0 = arith.constant 0 : index
    %c0_0 = arith.constant 0 : index
    %c0_1 = arith.constant 0 : index
    %0 = vector.load %arg1[%c0, %c0_0, %c0_1] : memref<1x8x1xi32, #tpu.memory_space<vmem>>, vector<1x8x1xi32>
    %1 = vector.shape_cast %0 : vector<1x8x1xi32> to vector<8x1xi32>
    %2 = tpu.iota {dimensions = array<i32: 1>} : vector<8x128xi32>
    %3 = vector.broadcast %1 : vector<8x1xi32> to vector<8x128xi32>
    %4 = arith.cmpi eq, %2, %3 : vector<8x128xi32>
    %5 = arith.extui %4 : vector<8x128xi1> to vector<8x128xi32>
    %6 = arith.sitofp %5 : vector<8x128xi32> to vector<8x128xf32>
    %c0_2 = arith.constant 0 : index
    %c0_3 = arith.constant 0 : index
    %7 = vector.load %arg3[%c0_2, %c0_3] : memref<128x32xf32, #tpu.memory_space<vmem>>, vector<128x32xf32>
    %cst = arith.constant dense<0.000000e+00> : vector<8x32xf32>
    %8 = tpu.matmul %6, %7, %cst {dimension_numbers = #tpu.dot_dimension_numbers<[1], [0], [0], [1], [0, 0, 1, 1], [], []>} : vector<8x128xf32>, vector<128x32xf32>, vector<8x32xf32> -> vector<8x32xf32>
    %c0_4 = arith.constant 0 : index
    %c0_5 = arith.constant 0 : index
    %9 = vector.load %arg5[%c0_4, %c0_5] : memref<2x32xf32, #tpu.memory_space<vmem>>, vector<2x32xf32>
    %c0_6 = arith.constant 0 : index
    %c0_7 = arith.constant 0 : index
    %10 = vector.load %arg4[%c0_6, %c0_7] : memref<8x32xf32, #tpu.memory_space<vmem>>, vector<8x32xf32>
    %11 = arith.addf %8, %10 : vector<8x32xf32>
    %12 = vector.extract_strided_slice %9 {offsets = [0, 0], sizes = [1, 32], strides = [1, 1]} : vector<2x32xf32> to vector<1x32xf32>
    %13 = vector.extract_strided_slice %9 {offsets = [1, 0], sizes = [1, 32], strides = [1, 1]} : vector<2x32xf32> to vector<1x32xf32>
    %cst_8 = arith.constant dense<0.000000e+00> : vector<8xf32>
    %14 = vector.multi_reduction <add>, %11, %cst_8 [1] : vector<8x32xf32> to vector<8xf32>
    %15 = vector.shape_cast %14 : vector<8xf32> to vector<8x1xf32>
    %cst_9 = arith.constant 3.200000e+01 : f32
    %16 = vector.broadcast %cst_9 : f32 to vector<8x1xf32>
    %17 = arith.divf %15, %16 : vector<8x1xf32>
    %18 = vector.broadcast %17 : vector<8x1xf32> to vector<8x32xf32>
    %19 = arith.subf %11, %18 : vector<8x32xf32>
    %20 = arith.mulf %19, %19 : vector<8x32xf32>
    %cst_10 = arith.constant dense<0.000000e+00> : vector<8xf32>
    %21 = vector.multi_reduction <add>, %20, %cst_10 [1] : vector<8x32xf32> to vector<8xf32>
    %22 = vector.shape_cast %21 : vector<8xf32> to vector<8x1xf32>
    %cst_11 = arith.constant 3.200000e+01 : f32
    %23 = vector.broadcast %cst_11 : f32 to vector<8x1xf32>
    %24 = arith.divf %22, %23 : vector<8x1xf32>
    %25 = vector.broadcast %17 : vector<8x1xf32> to vector<8x32xf32>
    %26 = arith.subf %11, %25 : vector<8x32xf32>
    %cst_12 = arith.constant 9.99999996E-13 : f32
    %27 = vector.broadcast %cst_12 : f32 to vector<8x1xf32>
    %28 = arith.addf %24, %27 : vector<8x1xf32>
    %29 = math.rsqrt %28 : vector<8x1xf32>
    %30 = vector.broadcast %29 : vector<8x1xf32> to vector<8x32xf32>
    %31 = arith.mulf %26, %30 : vector<8x32xf32>
    %32 = vector.broadcast %12 : vector<1x32xf32> to vector<8x32xf32>
    %33 = arith.mulf %31, %32 : vector<8x32xf32>
    %34 = vector.broadcast %13 : vector<1x32xf32> to vector<8x32xf32>
    %35 = arith.addf %33, %34 : vector<8x32xf32>
    %c0_13 = arith.constant 0 : index
    %c0_14 = arith.constant 0 : index
    %c0_15 = arith.constant 0 : index
    %36 = vector.load %arg2[%c0_13, %c0_14, %c0_15] : memref<1x1x8xf32, #tpu.memory_space<vmem>>, vector<1x1x8xf32>
    %37 = vector.shape_cast %36 : vector<1x1x8xf32> to vector<1x8xf32>
    %38 = vector.shape_cast %37 : vector<1x8xf32> to vector<1x1x8xf32>
    %39 = arith.truncf %35 : vector<8x32xf32> to vector<8x32xbf16>
    %c0_16 = arith.constant 0 : index
    %c0_17 = arith.constant 0 : index
    %c0_18 = arith.constant 0 : index
    %40 = vector.load %arg6[%c0_16, %c0_17, %c0_18] : memref<2x32x96xbf16, #tpu.memory_space<vmem>>, vector<1x32x96xbf16>
    %41 = vector.shape_cast %40 : vector<1x32x96xbf16> to vector<32x96xbf16>
    %cst_19 = arith.constant dense<0.000000e+00> : vector<8x96xf32>
    %42 = tpu.matmul %39, %41, %cst_19 {dimension_numbers = #tpu.dot_dimension_numbers<[1], [0], [0], [1], [0, 0, 1, 1], [], []>} : vector<8x32xbf16>, vector<32x96xbf16>, vector<8x96xf32> -> vector<8x96xf32>
    %c0_20 = arith.constant 0 : index
    %c0_21 = arith.constant 0 : index
    %c0_22 = arith.constant 0 : index
    %43 = vector.load %arg7[%c0_20, %c0_21, %c0_22] : memref<2x1x96xf32, #tpu.memory_space<vmem>>, vector<1x1x96xf32>
    %44 = vector.shape_cast %43 : vector<1x1x96xf32> to vector<1x96xf32>
    %45 = vector.broadcast %44 : vector<1x96xf32> to vector<8x96xf32>
    %46 = arith.addf %42, %45 : vector<8x96xf32>
    %47 = arith.truncf %46 : vector<8x96xf32> to vector<8x96xbf16>
    %48 = vector.extract_strided_slice %47 {offsets = [0, 0], sizes = [8, 48], strides = [1, 1]} : vector<8x96xbf16> to vector<8x48xbf16>
    %49 = vector.extract_strided_slice %47 {offsets = [0, 48], sizes = [8, 48], strides = [1, 1]} : vector<8x96xbf16> to vector<8x48xbf16>
    %50 = vector.shape_cast %48 : vector<8x48xbf16> to vector<1x8x48xbf16>
    %51 = vector.shape_cast %49 : vector<8x48xbf16> to vector<1x8x48xbf16>
    %52 = tpu.concatenate %50, %51 in 0 : vector<1x8x48xbf16>, vector<1x8x48xbf16> -> vector<2x8x48xbf16>
    %53 = vector.extract_strided_slice %52 {offsets = [0, 0, 0], sizes = [2, 8, 16], strides = [1, 1, 1]} : vector<2x8x48xbf16> to vector<2x8x16xbf16>
    %54 = vector.extract_strided_slice %52 {offsets = [0, 0, 16], sizes = [2, 8, 16], strides = [1, 1, 1]} : vector<2x8x48xbf16> to vector<2x8x16xbf16>
    %55 = vector.extract_strided_slice %52 {offsets = [0, 0, 32], sizes = [2, 8, 16], strides = [1, 1, 1]} : vector<2x8x48xbf16> to vector<2x8x16xbf16>
    "tpu.trace_start"() <{level = 10 : i32, message = "hqd,hkd->hqk"}> : () -> ()
    %cst_23 = arith.constant dense<0.000000e+00> : vector<2x8x8xf32>
    %56 = tpu.matmul %53, %54, %cst_23 {dimension_numbers = #tpu.dot_dimension_numbers<[2], [2], [1], [1], [0, 0, 0, 1, 1, 1], [0], [0]>} : vector<2x8x16xbf16>, vector<2x8x16xbf16>, vector<2x8x8xf32> -> vector<2x8x8xf32>
    "tpu.trace_stop"() : () -> ()
    %cst_24 = arith.constant 2.500000e-01 : f32
    %57 = vector.broadcast %cst_24 : f32 to vector<2x8x8xf32>
    %58 = arith.mulf %56, %57 : vector<2x8x8xf32>
    %59 = vector.broadcast %38 : vector<1x1x8xf32> to vector<2x8x8xf32>
    %60 = arith.addf %58, %59 : vector<2x8x8xf32>
    %cst_25 = arith.constant dense<0xFF800000> : vector<2x8xf32>
    %61 = vector.multi_reduction <maximumf>, %60, %cst_25 [2] : vector<2x8x8xf32> to vector<2x8xf32>
    %62 = vector.shape_cast %61 : vector<2x8xf32> to vector<2x8x1xf32>
    %63 = vector.broadcast %62 : vector<2x8x1xf32> to vector<2x8x8xf32>
    %64 = arith.subf %60, %63 : vector<2x8x8xf32>
    %65 = math.exp %64 : vector<2x8x8xf32>
    %cst_26 = arith.constant dense<0.000000e+00> : vector<2x8xf32>
    %66 = vector.multi_reduction <add>, %65, %cst_26 [2] : vector<2x8x8xf32> to vector<2x8xf32>
    %67 = vector.shape_cast %66 : vector<2x8xf32> to vector<2x8x1xf32>
    %68 = vector.broadcast %67 : vector<2x8x1xf32> to vector<2x8x8xf32>
    %69 = arith.divf %65, %68 : vector<2x8x8xf32>
    %70 = arith.truncf %69 : vector<2x8x8xf32> to vector<2x8x8xbf16>
    "tpu.trace_start"() <{level = 10 : i32, message = "hqk,hkd->hqd"}> : () -> ()
    %cst_27 = arith.constant dense<0.000000e+00> : vector<2x8x16xf32>
    %71 = tpu.matmul %70, %55, %cst_27 {dimension_numbers = #tpu.dot_dimension_numbers<[2], [1], [1], [2], [0, 0, 0, 1, 1, 2], [0], [0]>} : vector<2x8x8xbf16>, vector<2x8x16xbf16>, vector<2x8x16xf32> -> vector<2x8x16xf32>
    "tpu.trace_stop"() : () -> ()
    %72 = arith.truncf %71 : vector<2x8x16xf32> to vector<2x8x16xbf16>
    %c0_28 = arith.constant 0 : index
    %c0_29 = arith.constant 0 : index
    %c0_30 = arith.constant 0 : index
    %c0_31 = arith.constant 0 : index
    %73 = vector.load %arg8[%c0_28, %c0_29, %c0_30, %c0_31] : memref<2x2x16x32xbf16, #tpu.memory_space<vmem>>, vector<1x2x16x32xbf16>
    %74 = vector.shape_cast %73 : vector<1x2x16x32xbf16> to vector<2x16x32xbf16>
    "tpu.trace_start"() <{level = 10 : i32, message = "hqd,hdo->hqo"}> : () -> ()
    %cst_32 = arith.constant dense<0.000000e+00> : vector<2x8x32xf32>
    %75 = tpu.matmul %72, %74, %cst_32 {dimension_numbers = #tpu.dot_dimension_numbers<[2], [1], [1], [2], [0, 0, 0, 1, 1, 2], [0], [0]>} : vector<2x8x16xbf16>, vector<2x16x32xbf16>, vector<2x8x32xf32> -> vector<2x8x32xf32>
    "tpu.trace_stop"() : () -> ()
    %c0_33 = arith.constant 0 : index
    %c0_34 = arith.constant 0 : index
    %c0_35 = arith.constant 0 : index
    %76 = vector.load %arg9[%c0_33, %c0_34, %c0_35] : memref<2x6x32xf32, #tpu.memory_space<vmem>>, vector<1x6x32xf32>
    %77 = vector.shape_cast %76 : vector<1x6x32xf32> to vector<6x32xf32>
    %78 = vector.extract_strided_slice %75 {offsets = [0, 0, 0], sizes = [1, 8, 32], strides = [1, 1, 1]} : vector<2x8x32xf32> to vector<1x8x32xf32>
    %79 = vector.shape_cast %78 : vector<1x8x32xf32> to vector<8x32xf32>
    %80 = vector.extract_strided_slice %75 {offsets = [1, 0, 0], sizes = [1, 8, 32], strides = [1, 1, 1]} : vector<2x8x32xf32> to vector<1x8x32xf32>
    %81 = vector.shape_cast %80 : vector<1x8x32xf32> to vector<8x32xf32>
    %82 = arith.addf %79, %81 : vector<8x32xf32>
    %83 = vector.extract_strided_slice %77 {offsets = [0, 0], sizes = [1, 32], strides = [1, 1]} : vector<6x32xf32> to vector<1x32xf32>
    %84 = vector.broadcast %83 : vector<1x32xf32> to vector<8x32xf32>
    %85 = arith.addf %82, %84 : vector<8x32xf32>
    %86 = arith.addf %85, %35 : vector<8x32xf32>
    %87 = vector.extract_strided_slice %77 {offsets = [1, 0], sizes = [1, 32], strides = [1, 1]} : vector<6x32xf32> to vector<1x32xf32>
    %88 = vector.extract_strided_slice %77 {offsets = [2, 0], sizes = [1, 32], strides = [1, 1]} : vector<6x32xf32> to vector<1x32xf32>
    %cst_36 = arith.constant dense<0.000000e+00> : vector<8xf32>
    %89 = vector.multi_reduction <add>, %86, %cst_36 [1] : vector<8x32xf32> to vector<8xf32>
    %90 = vector.shape_cast %89 : vector<8xf32> to vector<8x1xf32>
    %cst_37 = arith.constant 3.200000e+01 : f32
    %91 = vector.broadcast %cst_37 : f32 to vector<8x1xf32>
    %92 = arith.divf %90, %91 : vector<8x1xf32>
    %93 = vector.broadcast %92 : vector<8x1xf32> to vector<8x32xf32>
    %94 = arith.subf %86, %93 : vector<8x32xf32>
    %95 = arith.mulf %94, %94 : vector<8x32xf32>
    %cst_38 = arith.constant dense<0.000000e+00> : vector<8xf32>
    %96 = vector.multi_reduction <add>, %95, %cst_38 [1] : vector<8x32xf32> to vector<8xf32>
    %97 = vector.shape_cast %96 : vector<8xf32> to vector<8x1xf32>
    %cst_39 = arith.constant 3.200000e+01 : f32
    %98 = vector.broadcast %cst_39 : f32 to vector<8x1xf32>
    %99 = arith.divf %97, %98 : vector<8x1xf32>
    %100 = vector.broadcast %92 : vector<8x1xf32> to vector<8x32xf32>
    %101 = arith.subf %86, %100 : vector<8x32xf32>
    %cst_40 = arith.constant 9.99999996E-13 : f32
    %102 = vector.broadcast %cst_40 : f32 to vector<8x1xf32>
    %103 = arith.addf %99, %102 : vector<8x1xf32>
    %104 = math.rsqrt %103 : vector<8x1xf32>
    %105 = vector.broadcast %104 : vector<8x1xf32> to vector<8x32xf32>
    %106 = arith.mulf %101, %105 : vector<8x32xf32>
    %107 = vector.broadcast %87 : vector<1x32xf32> to vector<8x32xf32>
    %108 = arith.mulf %106, %107 : vector<8x32xf32>
    %109 = vector.broadcast %88 : vector<1x32xf32> to vector<8x32xf32>
    %110 = arith.addf %108, %109 : vector<8x32xf32>
    %111 = arith.truncf %110 : vector<8x32xf32> to vector<8x32xbf16>
    %c0_41 = arith.constant 0 : index
    %c0_42 = arith.constant 0 : index
    %c0_43 = arith.constant 0 : index
    %112 = vector.load %arg10[%c0_41, %c0_42, %c0_43] : memref<2x32x64xbf16, #tpu.memory_space<vmem>>, vector<1x32x64xbf16>
    %113 = vector.shape_cast %112 : vector<1x32x64xbf16> to vector<32x64xbf16>
    %cst_44 = arith.constant dense<0.000000e+00> : vector<8x64xf32>
    %114 = tpu.matmul %111, %113, %cst_44 {dimension_numbers = #tpu.dot_dimension_numbers<[1], [0], [0], [1], [0, 0, 1, 1], [], []>} : vector<8x32xbf16>, vector<32x64xbf16>, vector<8x64xf32> -> vector<8x64xf32>
    %c0_45 = arith.constant 0 : index
    %c0_46 = arith.constant 0 : index
    %c0_47 = arith.constant 0 : index
    %115 = vector.load %arg11[%c0_45, %c0_46, %c0_47] : memref<2x1x64xf32, #tpu.memory_space<vmem>>, vector<1x1x64xf32>
    %116 = vector.shape_cast %115 : vector<1x1x64xf32> to vector<1x64xf32>
    %117 = vector.broadcast %116 : vector<1x64xf32> to vector<8x64xf32>
    %118 = arith.addf %114, %117 : vector<8x64xf32>
    %cst_48 = arith.constant 5.000000e-01 : f32
    %119 = vector.broadcast %cst_48 : f32 to vector<8x64xf32>
    %120 = arith.mulf %119, %118 : vector<8x64xf32>
    %cst_49 = arith.constant 4.471500e-02 : f32
    %121 = vector.broadcast %cst_49 : f32 to vector<8x64xf32>
    %122 = arith.mulf %121, %118 : vector<8x64xf32>
    %123 = arith.mulf %122, %118 : vector<8x64xf32>
    %124 = arith.mulf %123, %118 : vector<8x64xf32>
    %125 = arith.addf %118, %124 : vector<8x64xf32>
    %cst_50 = arith.constant 0.797884583 : f32
    %126 = vector.broadcast %cst_50 : f32 to vector<8x64xf32>
    %127 = arith.mulf %126, %125 : vector<8x64xf32>
    %128 = math.tanh %127 : vector<8x64xf32>
    %cst_51 = arith.constant 1.000000e+00 : f32
    %129 = vector.broadcast %cst_51 : f32 to vector<8x64xf32>
    %130 = arith.addf %129, %128 : vector<8x64xf32>
    %131 = arith.mulf %120, %130 : vector<8x64xf32>
    %132 = arith.truncf %131 : vector<8x64xf32> to vector<8x64xbf16>
    %c0_52 = arith.constant 0 : index
    %c0_53 = arith.constant 0 : index
    %c0_54 = arith.constant 0 : index
    %133 = vector.load %arg12[%c0_52, %c0_53, %c0_54] : memref<2x64x32xbf16, #tpu.memory_space<vmem>>, vector<1x64x32xbf16>
    %134 = vector.shape_cast %133 : vector<1x64x32xbf16> to vector<64x32xbf16>
    %cst_55 = arith.constant dense<0.000000e+00> : vector<8x32xf32>
    %135 = tpu.matmul %132, %134, %cst_55 {dimension_numbers = #tpu.dot_dimension_numbers<[1], [0], [0], [1], [0, 0, 1, 1], [], []>} : vector<8x64xbf16>, vector<64x32xbf16>, vector<8x32xf32> -> vector<8x32xf32>
    %136 = vector.extract_strided_slice %77 {offsets = [3, 0], sizes = [1, 32], strides = [1, 1]} : vector<6x32xf32> to vector<1x32xf32>
    %137 = vector.broadcast %136 : vector<1x32xf32> to vector<8x32xf32>
    %138 = arith.addf %135, %137 : vector<8x32xf32>
    %139 = arith.addf %138, %110 : vector<8x32xf32>
    %140 = vector.extract_strided_slice %77 {offsets = [4, 0], sizes = [1, 32], strides = [1, 1]} : vector<6x32xf32> to vector<1x32xf32>
    %141 = vector.extract_strided_slice %77 {offsets = [5, 0], sizes = [1, 32], strides = [1, 1]} : vector<6x32xf32> to vector<1x32xf32>
    %cst_56 = arith.constant dense<0.000000e+00> : vector<8xf32>
    %142 = vector.multi_reduction <add>, %139, %cst_56 [1] : vector<8x32xf32> to vector<8xf32>
    %143 = vector.shape_cast %142 : vector<8xf32> to vector<8x1xf32>
    %cst_57 = arith.constant 3.200000e+01 : f32
    %144 = vector.broadcast %cst_57 : f32 to vector<8x1xf32>
    %145 = arith.divf %143, %144 : vector<8x1xf32>
    %146 = vector.broadcast %145 : vector<8x1xf32> to vector<8x32xf32>
    %147 = arith.subf %139, %146 : vector<8x32xf32>
    %148 = arith.mulf %147, %147 : vector<8x32xf32>
    %cst_58 = arith.constant dense<0.000000e+00> : vector<8xf32>
    %149 = vector.multi_reduction <add>, %148, %cst_58 [1] : vector<8x32xf32> to vector<8xf32>
    %150 = vector.shape_cast %149 : vector<8xf32> to vector<8x1xf32>
    %cst_59 = arith.constant 3.200000e+01 : f32
    %151 = vector.broadcast %cst_59 : f32 to vector<8x1xf32>
    %152 = arith.divf %150, %151 : vector<8x1xf32>
    %153 = vector.broadcast %145 : vector<8x1xf32> to vector<8x32xf32>
    %154 = arith.subf %139, %153 : vector<8x32xf32>
    %cst_60 = arith.constant 9.99999996E-13 : f32
    %155 = vector.broadcast %cst_60 : f32 to vector<8x1xf32>
    %156 = arith.addf %152, %155 : vector<8x1xf32>
    %157 = math.rsqrt %156 : vector<8x1xf32>
    %158 = vector.broadcast %157 : vector<8x1xf32> to vector<8x32xf32>
    %159 = arith.mulf %154, %158 : vector<8x32xf32>
    %160 = vector.broadcast %140 : vector<1x32xf32> to vector<8x32xf32>
    %161 = arith.mulf %159, %160 : vector<8x32xf32>
    %162 = vector.broadcast %141 : vector<1x32xf32> to vector<8x32xf32>
    %163 = arith.addf %161, %162 : vector<8x32xf32>
    %164 = arith.truncf %163 : vector<8x32xf32> to vector<8x32xbf16>
    %c1 = arith.constant 1 : index
    %c0_61 = arith.constant 0 : index
    %c0_62 = arith.constant 0 : index
    %165 = vector.load %arg6[%c1, %c0_61, %c0_62] : memref<2x32x96xbf16, #tpu.memory_space<vmem>>, vector<1x32x96xbf16>
    %166 = vector.shape_cast %165 : vector<1x32x96xbf16> to vector<32x96xbf16>
    %cst_63 = arith.constant dense<0.000000e+00> : vector<8x96xf32>
    %167 = tpu.matmul %164, %166, %cst_63 {dimension_numbers = #tpu.dot_dimension_numbers<[1], [0], [0], [1], [0, 0, 1, 1], [], []>} : vector<8x32xbf16>, vector<32x96xbf16>, vector<8x96xf32> -> vector<8x96xf32>
    %c1_64 = arith.constant 1 : index
    %c0_65 = arith.constant 0 : index
    %c0_66 = arith.constant 0 : index
    %168 = vector.load %arg7[%c1_64, %c0_65, %c0_66] : memref<2x1x96xf32, #tpu.memory_space<vmem>>, vector<1x1x96xf32>
    %169 = vector.shape_cast %168 : vector<1x1x96xf32> to vector<1x96xf32>
    %170 = vector.broadcast %169 : vector<1x96xf32> to vector<8x96xf32>
    %171 = arith.addf %167, %170 : vector<8x96xf32>
    %172 = arith.truncf %171 : vector<8x96xf32> to vector<8x96xbf16>
    %173 = vector.extract_strided_slice %172 {offsets = [0, 0], sizes = [8, 48], strides = [1, 1]} : vector<8x96xbf16> to vector<8x48xbf16>
    %174 = vector.extract_strided_slice %172 {offsets = [0, 48], sizes = [8, 48], strides = [1, 1]} : vector<8x96xbf16> to vector<8x48xbf16>
    %175 = vector.shape_cast %173 : vector<8x48xbf16> to vector<1x8x48xbf16>
    %176 = vector.shape_cast %174 : vector<8x48xbf16> to vector<1x8x48xbf16>
    %177 = tpu.concatenate %175, %176 in 0 : vector<1x8x48xbf16>, vector<1x8x48xbf16> -> vector<2x8x48xbf16>
    %178 = vector.extract_strided_slice %177 {offsets = [0, 0, 0], sizes = [2, 8, 16], strides = [1, 1, 1]} : vector<2x8x48xbf16> to vector<2x8x16xbf16>
    %179 = vector.extract_strided_slice %177 {offsets = [0, 0, 16], sizes = [2, 8, 16], strides = [1, 1, 1]} : vector<2x8x48xbf16> to vector<2x8x16xbf16>
    %180 = vector.extract_strided_slice %177 {offsets = [0, 0, 32], sizes = [2, 8, 16], strides = [1, 1, 1]} : vector<2x8x48xbf16> to vector<2x8x16xbf16>
    "tpu.trace_start"() <{level = 10 : i32, message = "hqd,hkd->hqk"}> : () -> ()
    %cst_67 = arith.constant dense<0.000000e+00> : vector<2x8x8xf32>
    %181 = tpu.matmul %178, %179, %cst_67 {dimension_numbers = #tpu.dot_dimension_numbers<[2], [2], [1], [1], [0, 0, 0, 1, 1, 1], [0], [0]>} : vector<2x8x16xbf16>, vector<2x8x16xbf16>, vector<2x8x8xf32> -> vector<2x8x8xf32>
    "tpu.trace_stop"() : () -> ()
    %cst_68 = arith.constant 2.500000e-01 : f32
    %182 = vector.broadcast %cst_68 : f32 to vector<2x8x8xf32>
    %183 = arith.mulf %181, %182 : vector<2x8x8xf32>
    %184 = vector.broadcast %38 : vector<1x1x8xf32> to vector<2x8x8xf32>
    %185 = arith.addf %183, %184 : vector<2x8x8xf32>
    %cst_69 = arith.constant dense<0xFF800000> : vector<2x8xf32>
    %186 = vector.multi_reduction <maximumf>, %185, %cst_69 [2] : vector<2x8x8xf32> to vector<2x8xf32>
    %187 = vector.shape_cast %186 : vector<2x8xf32> to vector<2x8x1xf32>
    %188 = vector.broadcast %187 : vector<2x8x1xf32> to vector<2x8x8xf32>
    %189 = arith.subf %185, %188 : vector<2x8x8xf32>
    %190 = math.exp %189 : vector<2x8x8xf32>
    %cst_70 = arith.constant dense<0.000000e+00> : vector<2x8xf32>
    %191 = vector.multi_reduction <add>, %190, %cst_70 [2] : vector<2x8x8xf32> to vector<2x8xf32>
    %192 = vector.shape_cast %191 : vector<2x8xf32> to vector<2x8x1xf32>
    %193 = vector.broadcast %192 : vector<2x8x1xf32> to vector<2x8x8xf32>
    %194 = arith.divf %190, %193 : vector<2x8x8xf32>
    %195 = arith.truncf %194 : vector<2x8x8xf32> to vector<2x8x8xbf16>
    "tpu.trace_start"() <{level = 10 : i32, message = "hqk,hkd->hqd"}> : () -> ()
    %cst_71 = arith.constant dense<0.000000e+00> : vector<2x8x16xf32>
    %196 = tpu.matmul %195, %180, %cst_71 {dimension_numbers = #tpu.dot_dimension_numbers<[2], [1], [1], [2], [0, 0, 0, 1, 1, 2], [0], [0]>} : vector<2x8x8xbf16>, vector<2x8x16xbf16>, vector<2x8x16xf32> -> vector<2x8x16xf32>
    "tpu.trace_stop"() : () -> ()
    %197 = arith.truncf %196 : vector<2x8x16xf32> to vector<2x8x16xbf16>
    %c1_72 = arith.constant 1 : index
    %c0_73 = arith.constant 0 : index
    %c0_74 = arith.constant 0 : index
    %c0_75 = arith.constant 0 : index
    %198 = vector.load %arg8[%c1_72, %c0_73, %c0_74, %c0_75] : memref<2x2x16x32xbf16, #tpu.memory_space<vmem>>, vector<1x2x16x32xbf16>
    %199 = vector.shape_cast %198 : vector<1x2x16x32xbf16> to vector<2x16x32xbf16>
    "tpu.trace_start"() <{level = 10 : i32, message = "hqd,hdo->hqo"}> : () -> ()
    %cst_76 = arith.constant dense<0.000000e+00> : vector<2x8x32xf32>
    %200 = tpu.matmul %197, %199, %cst_76 {dimension_numbers = #tpu.dot_dimension_numbers<[2], [1], [1], [2], [0, 0, 0, 1, 1, 2], [0], [0]>} : vector<2x8x16xbf16>, vector<2x16x32xbf16>, vector<2x8x32xf32> -> vector<2x8x32xf32>
    "tpu.trace_stop"() : () -> ()
    %c1_77 = arith.constant 1 : index
    %c0_78 = arith.constant 0 : index
    %c0_79 = arith.constant 0 : index
    %201 = vector.load %arg9[%c1_77, %c0_78, %c0_79] : memref<2x6x32xf32, #tpu.memory_space<vmem>>, vector<1x6x32xf32>
    %202 = vector.shape_cast %201 : vector<1x6x32xf32> to vector<6x32xf32>
    %203 = vector.extract_strided_slice %200 {offsets = [0, 0, 0], sizes = [1, 8, 32], strides = [1, 1, 1]} : vector<2x8x32xf32> to vector<1x8x32xf32>
    %204 = vector.shape_cast %203 : vector<1x8x32xf32> to vector<8x32xf32>
    %205 = vector.extract_strided_slice %200 {offsets = [1, 0, 0], sizes = [1, 8, 32], strides = [1, 1, 1]} : vector<2x8x32xf32> to vector<1x8x32xf32>
    %206 = vector.shape_cast %205 : vector<1x8x32xf32> to vector<8x32xf32>
    %207 = arith.addf %204, %206 : vector<8x32xf32>
    %208 = vector.extract_strided_slice %202 {offsets = [0, 0], sizes = [1, 32], strides = [1, 1]} : vector<6x32xf32> to vector<1x32xf32>
    %209 = vector.broadcast %208 : vector<1x32xf32> to vector<8x32xf32>
    %210 = arith.addf %207, %209 : vector<8x32xf32>
    %211 = arith.addf %210, %163 : vector<8x32xf32>
    %212 = vector.extract_strided_slice %202 {offsets = [1, 0], sizes = [1, 32], strides = [1, 1]} : vector<6x32xf32> to vector<1x32xf32>
    %213 = vector.extract_strided_slice %202 {offsets = [2, 0], sizes = [1, 32], strides = [1, 1]} : vector<6x32xf32> to vector<1x32xf32>
    %cst_80 = arith.constant dense<0.000000e+00> : vector<8xf32>
    %214 = vector.multi_reduction <add>, %211, %cst_80 [1] : vector<8x32xf32> to vector<8xf32>
    %215 = vector.shape_cast %214 : vector<8xf32> to vector<8x1xf32>
    %cst_81 = arith.constant 3.200000e+01 : f32
    %216 = vector.broadcast %cst_81 : f32 to vector<8x1xf32>
    %217 = arith.divf %215, %216 : vector<8x1xf32>
    %218 = vector.broadcast %217 : vector<8x1xf32> to vector<8x32xf32>
    %219 = arith.subf %211, %218 : vector<8x32xf32>
    %220 = arith.mulf %219, %219 : vector<8x32xf32>
    %cst_82 = arith.constant dense<0.000000e+00> : vector<8xf32>
    %221 = vector.multi_reduction <add>, %220, %cst_82 [1] : vector<8x32xf32> to vector<8xf32>
    %222 = vector.shape_cast %221 : vector<8xf32> to vector<8x1xf32>
    %cst_83 = arith.constant 3.200000e+01 : f32
    %223 = vector.broadcast %cst_83 : f32 to vector<8x1xf32>
    %224 = arith.divf %222, %223 : vector<8x1xf32>
    %225 = vector.broadcast %217 : vector<8x1xf32> to vector<8x32xf32>
    %226 = arith.subf %211, %225 : vector<8x32xf32>
    %cst_84 = arith.constant 9.99999996E-13 : f32
    %227 = vector.broadcast %cst_84 : f32 to vector<8x1xf32>
    %228 = arith.addf %224, %227 : vector<8x1xf32>
    %229 = math.rsqrt %228 : vector<8x1xf32>
    %230 = vector.broadcast %229 : vector<8x1xf32> to vector<8x32xf32>
    %231 = arith.mulf %226, %230 : vector<8x32xf32>
    %232 = vector.broadcast %212 : vector<1x32xf32> to vector<8x32xf32>
    %233 = arith.mulf %231, %232 : vector<8x32xf32>
    %234 = vector.broadcast %213 : vector<1x32xf32> to vector<8x32xf32>
    %235 = arith.addf %233, %234 : vector<8x32xf32>
    %236 = arith.truncf %235 : vector<8x32xf32> to vector<8x32xbf16>
    %c1_85 = arith.constant 1 : index
    %c0_86 = arith.constant 0 : index
    %c0_87 = arith.constant 0 : index
    %237 = vector.load %arg10[%c1_85, %c0_86, %c0_87] : memref<2x32x64xbf16, #tpu.memory_space<vmem>>, vector<1x32x64xbf16>
    %238 = vector.shape_cast %237 : vector<1x32x64xbf16> to vector<32x64xbf16>
    %cst_88 = arith.constant dense<0.000000e+00> : vector<8x64xf32>
    %239 = tpu.matmul %236, %238, %cst_88 {dimension_numbers = #tpu.dot_dimension_numbers<[1], [0], [0], [1], [0, 0, 1, 1], [], []>} : vector<8x32xbf16>, vector<32x64xbf16>, vector<8x64xf32> -> vector<8x64xf32>
    %c1_89 = arith.constant 1 : index
    %c0_90 = arith.constant 0 : index
    %c0_91 = arith.constant 0 : index
    %240 = vector.load %arg11[%c1_89, %c0_90, %c0_91] : memref<2x1x64xf32, #tpu.memory_space<vmem>>, vector<1x1x64xf32>
    %241 = vector.shape_cast %240 : vector<1x1x64xf32> to vector<1x64xf32>
    %242 = vector.broadcast %241 : vector<1x64xf32> to vector<8x64xf32>
    %243 = arith.addf %239, %242 : vector<8x64xf32>
    %cst_92 = arith.constant 5.000000e-01 : f32
    %244 = vector.broadcast %cst_92 : f32 to vector<8x64xf32>
    %245 = arith.mulf %244, %243 : vector<8x64xf32>
    %cst_93 = arith.constant 4.471500e-02 : f32
    %246 = vector.broadcast %cst_93 : f32 to vector<8x64xf32>
    %247 = arith.mulf %246, %243 : vector<8x64xf32>
    %248 = arith.mulf %247, %243 : vector<8x64xf32>
    %249 = arith.mulf %248, %243 : vector<8x64xf32>
    %250 = arith.addf %243, %249 : vector<8x64xf32>
    %cst_94 = arith.constant 0.797884583 : f32
    %251 = vector.broadcast %cst_94 : f32 to vector<8x64xf32>
    %252 = arith.mulf %251, %250 : vector<8x64xf32>
    %253 = math.tanh %252 : vector<8x64xf32>
    %cst_95 = arith.constant 1.000000e+00 : f32
    %254 = vector.broadcast %cst_95 : f32 to vector<8x64xf32>
    %255 = arith.addf %254, %253 : vector<8x64xf32>
    %256 = arith.mulf %245, %255 : vector<8x64xf32>
    %257 = arith.truncf %256 : vector<8x64xf32> to vector<8x64xbf16>
    %c1_96 = arith.constant 1 : index
    %c0_97 = arith.constant 0 : index
    %c0_98 = arith.constant 0 : index
    %258 = vector.load %arg12[%c1_96, %c0_97, %c0_98] : memref<2x64x32xbf16, #tpu.memory_space<vmem>>, vector<1x64x32xbf16>
    %259 = vector.shape_cast %258 : vector<1x64x32xbf16> to vector<64x32xbf16>
    %cst_99 = arith.constant dense<0.000000e+00> : vector<8x32xf32>
    %260 = tpu.matmul %257, %259, %cst_99 {dimension_numbers = #tpu.dot_dimension_numbers<[1], [0], [0], [1], [0, 0, 1, 1], [], []>} : vector<8x64xbf16>, vector<64x32xbf16>, vector<8x32xf32> -> vector<8x32xf32>
    %261 = vector.extract_strided_slice %202 {offsets = [3, 0], sizes = [1, 32], strides = [1, 1]} : vector<6x32xf32> to vector<1x32xf32>
    %262 = vector.broadcast %261 : vector<1x32xf32> to vector<8x32xf32>
    %263 = arith.addf %260, %262 : vector<8x32xf32>
    %264 = arith.addf %263, %235 : vector<8x32xf32>
    %265 = vector.extract_strided_slice %202 {offsets = [4, 0], sizes = [1, 32], strides = [1, 1]} : vector<6x32xf32> to vector<1x32xf32>
    %266 = vector.extract_strided_slice %202 {offsets = [5, 0], sizes = [1, 32], strides = [1, 1]} : vector<6x32xf32> to vector<1x32xf32>
    %cst_100 = arith.constant dense<0.000000e+00> : vector<8xf32>
    %267 = vector.multi_reduction <add>, %264, %cst_100 [1] : vector<8x32xf32> to vector<8xf32>
    %268 = vector.shape_cast %267 : vector<8xf32> to vector<8x1xf32>
    %cst_101 = arith.constant 3.200000e+01 : f32
    %269 = vector.broadcast %cst_101 : f32 to vector<8x1xf32>
    %270 = arith.divf %268, %269 : vector<8x1xf32>
    %271 = vector.broadcast %270 : vector<8x1xf32> to vector<8x32xf32>
    %272 = arith.subf %264, %271 : vector<8x32xf32>
    %273 = arith.mulf %272, %272 : vector<8x32xf32>
    %cst_102 = arith.constant dense<0.000000e+00> : vector<8xf32>
    %274 = vector.multi_reduction <add>, %273, %cst_102 [1] : vector<8x32xf32> to vector<8xf32>
    %275 = vector.shape_cast %274 : vector<8xf32> to vector<8x1xf32>
    %cst_103 = arith.constant 3.200000e+01 : f32
    %276 = vector.broadcast %cst_103 : f32 to vector<8x1xf32>
    %277 = arith.divf %275, %276 : vector<8x1xf32>
    %278 = vector.broadcast %270 : vector<8x1xf32> to vector<8x32xf32>
    %279 = arith.subf %264, %278 : vector<8x32xf32>
    %cst_104 = arith.constant 9.99999996E-13 : f32
    %280 = vector.broadcast %cst_104 : f32 to vector<8x1xf32>
    %281 = arith.addf %277, %280 : vector<8x1xf32>
    %282 = math.rsqrt %281 : vector<8x1xf32>
    %283 = vector.broadcast %282 : vector<8x1xf32> to vector<8x32xf32>
    %284 = arith.mulf %279, %283 : vector<8x32xf32>
    %285 = vector.broadcast %265 : vector<1x32xf32> to vector<8x32xf32>
    %286 = arith.mulf %284, %285 : vector<8x32xf32>
    %287 = vector.broadcast %266 : vector<1x32xf32> to vector<8x32xf32>
    %288 = arith.addf %286, %287 : vector<8x32xf32>
    %289 = vector.extract_strided_slice %288 {offsets = [0, 0], sizes = [1, 32], strides = [1, 1]} : vector<8x32xf32> to vector<1x32xf32>
    %290 = arith.truncf %289 : vector<1x32xf32> to vector<1x32xbf16>
    %c0_105 = arith.constant 0 : index
    %c0_106 = arith.constant 0 : index
    %291 = vector.load %arg13[%c0_105, %c0_106] : memref<32x32xbf16, #tpu.memory_space<vmem>>, vector<32x32xbf16>
    %cst_107 = arith.constant dense<0.000000e+00> : vector<1x32xf32>
    %292 = tpu.matmul %290, %291, %cst_107 {dimension_numbers = #tpu.dot_dimension_numbers<[1], [0], [0], [1], [0, 0, 1, 1], [], []>} : vector<1x32xbf16>, vector<32x32xbf16>, vector<1x32xf32> -> vector<1x32xf32>
    %c0_108 = arith.constant 0 : index
    %c0_109 = arith.constant 0 : index
    %293 = vector.load %arg14[%c0_108, %c0_109] : memref<1x32xf32, #tpu.memory_space<vmem>>, vector<1x32xf32>
    %294 = arith.addf %292, %293 : vector<1x32xf32>
    %295 = math.tanh %294 : vector<1x32xf32>
    %296 = arith.truncf %295 : vector<1x32xf32> to vector<1x32xbf16>
    %c0_110 = arith.constant 0 : index
    %c0_111 = arith.constant 0 : index
    %297 = vector.load %arg15[%c0_110, %c0_111] : memref<32x128xbf16, #tpu.memory_space<vmem>>, vector<32x128xbf16>
    %cst_112 = arith.constant dense<0.000000e+00> : vector<1x128xf32>
    %298 = tpu.matmul %296, %297, %cst_112 {dimension_numbers = #tpu.dot_dimension_numbers<[1], [0], [0], [1], [0, 0, 1, 1], [], []>} : vector<1x32xbf16>, vector<32x128xbf16>, vector<1x128xf32> -> vector<1x128xf32>
    %c0_113 = arith.constant 0 : index
    %c0_114 = arith.constant 0 : index
    %299 = vector.load %arg16[%c0_113, %c0_114] : memref<1x128xf32, #tpu.memory_space<vmem>>, vector<1x128xf32>
    %300 = arith.addf %298, %299 : vector<1x128xf32>
    %301 = tpu.iota {dimensions = array<i32: 1>} : vector<1x128xi32>
    %c3_i32 = arith.constant 3 : i32
    %302 = vector.broadcast %c3_i32 : i32 to vector<1x128xi32>
    %303 = arith.cmpi slt, %301, %302 : vector<1x128xi32>
    %cst_115 = arith.constant -1.000000e+30 : f32
    %304 = vector.broadcast %cst_115 : f32 to vector<1x128xf32>
    %305 = arith.select %303, %300, %304 : vector<1x128xi1>, vector<1x128xf32>
    %cst_116 = arith.constant dense<0xFF800000> : vector<1xf32>
    %306 = vector.multi_reduction <maximumf>, %305, %cst_116 [1] : vector<1x128xf32> to vector<1xf32>
    %307 = vector.shape_cast %306 : vector<1xf32> to vector<1x1xf32>
    %308 = vector.broadcast %307 : vector<1x1xf32> to vector<1x128xf32>
    %309 = arith.subf %305, %308 : vector<1x128xf32>
    %310 = math.exp %309 : vector<1x128xf32>
    %cst_117 = arith.constant dense<0.000000e+00> : vector<1xf32>
    %311 = vector.multi_reduction <add>, %310, %cst_117 [1] : vector<1x128xf32> to vector<1xf32>
    %312 = vector.shape_cast %311 : vector<1xf32> to vector<1x1xf32>
    %313 = vector.broadcast %312 : vector<1x1xf32> to vector<1x128xf32>
    %314 = arith.divf %310, %313 : vector<1x128xf32>
    %c0_118 = arith.constant 0 : index
    %c0_119 = arith.constant 0 : index
    %c0_120 = arith.constant 0 : index
    %315 = vector.load %arg17[%c0_118, %c0_119, %c0_120] : memref<1x1x128xf32, #tpu.memory_space<vmem>>, vector<1x1x128xf32>
    %316 = vector.shape_cast %315 : vector<1x1x128xf32> to vector<1x128xf32>
    %317 = vector.shape_cast %314 : vector<1x128xf32> to vector<1x1x128xf32>
    tpu.vector_store %arg17[%c0_118, %c0_119, %c0_120], %317 {strides = array<i32>} : memref<1x1x128xf32, #tpu.memory_space<vmem>>, vector<1x1x128xf32>,
    return
  }
  func.func @transform_0(%arg0: i32) -> (i32, i32, i32) {
    %c0_i32 = arith.constant 0 : i32
    %c0_i32_0 = arith.constant 0 : i32
    %c0_i32_1 = arith.constant 0 : i32
    return %arg0, %c0_i32, %c0_i32_0 : i32, i32, i32
  }
  func.func @transform_1(%arg0: i32) -> (i32, i32, i32) {
    %c0_i32 = arith.constant 0 : i32
    %c0_i32_0 = arith.constant 0 : i32
    %c0_i32_1 = arith.constant 0 : i32
    return %arg0, %c0_i32, %c0_i32_0 : i32, i32, i32
  }
  func.func @transform_2(%arg0: i32) -> (i32, i32) {
    %c0_i32 = arith.constant 0 : i32
    %c0_i32_0 = arith.constant 0 : i32
    %c0_i32_1 = arith.constant 0 : i32
    return %c0_i32, %c0_i32_0 : i32, i32
  }
  func.func @transform_3(%arg0: i32) -> (i32, i32) {
    %c0_i32 = arith.constant 0 : i32
    %c0_i32_0 = arith.constant 0 : i32
    %c0_i32_1 = arith.constant 0 : i32
    return %c0_i32, %c0_i32_0 : i32, i32
  }
  func.func @transform_4(%arg0: i32) -> (i32, i32) {
    %c0_i32 = arith.constant 0 : i32
    %c0_i32_0 = arith.constant 0 : i32
    %c0_i32_1 = arith.constant 0 : i32
    return %c0_i32, %c0_i32_0 : i32, i32
  }
  func.func @transform_5(%arg0: i32) -> (i32, i32, i32) {
    %c0_i32 = arith.constant 0 : i32
    %c0_i32_0 = arith.constant 0 : i32
    %c0_i32_1 = arith.constant 0 : i32
    %c0_i32_2 = arith.constant 0 : i32
    return %c0_i32, %c0_i32_0, %c0_i32_1 : i32, i32, i32
  }
  func.func @transform_6(%arg0: i32) -> (i32, i32, i32) {
    %c0_i32 = arith.constant 0 : i32
    %c0_i32_0 = arith.constant 0 : i32
    %c0_i32_1 = arith.constant 0 : i32
    %c0_i32_2 = arith.constant 0 : i32
    return %c0_i32, %c0_i32_0, %c0_i32_1 : i32, i32, i32
  }
  func.func @transform_7(%arg0: i32) -> (i32, i32, i32, i32) {
    %c0_i32 = arith.constant 0 : i32
    %c0_i32_0 = arith.constant 0 : i32
    %c0_i32_1 = arith.constant 0 : i32
    %c0_i32_2 = arith.constant 0 : i32
    %c0_i32_3 = arith.constant 0 : i32
    return %c0_i32, %c0_i32_0, %c0_i32_1, %c0_i32_2 : i32, i32, i32, i32
  }
  func.func @transform_8(%arg0: i32) -> (i32, i32, i32) {
    %c0_i32 = arith.constant 0 : i32
    %c0_i32_0 = arith.constant 0 : i32
    %c0_i32_1 = arith.constant 0 : i32
    %c0_i32_2 = arith.constant 0 : i32
    return %c0_i32, %c0_i32_0, %c0_i32_1 : i32, i32, i32
  }
  func.func @transform_9(%arg0: i32) -> (i32, i32, i32) {
    %c0_i32 = arith.constant 0 : i32
    %c0_i32_0 = arith.constant 0 : i32
    %c0_i32_1 = arith.constant 0 : i32
    %c0_i32_2 = arith.constant 0 : i32
    return %c0_i32, %c0_i32_0, %c0_i32_1 : i32, i32, i32
  }
  func.func @transform_10(%arg0: i32) -> (i32, i32, i32) {
    %c0_i32 = arith.constant 0 : i32
    %c0_i32_0 = arith.constant 0 : i32
    %c0_i32_1 = arith.constant 0 : i32
    %c0_i32_2 = arith.constant 0 : i32
    return %c0_i32, %c0_i32_0, %c0_i32_1 : i32, i32, i32
  }
  func.func @transform_11(%arg0: i32) -> (i32, i32, i32) {
    %c0_i32 = arith.constant 0 : i32
    %c0_i32_0 = arith.constant 0 : i32
    %c0_i32_1 = arith.constant 0 : i32
    %c0_i32_2 = arith.constant 0 : i32
    return %c0_i32, %c0_i32_0, %c0_i32_1 : i32, i32, i32
  }
  func.func @transform_12(%arg0: i32) -> (i32, i32) {
    %c0_i32 = arith.constant 0 : i32
    %c0_i32_0 = arith.constant 0 : i32
    %c0_i32_1 = arith.constant 0 : i32
    return %c0_i32, %c0_i32_0 : i32, i32
  }
  func.func @transform_13(%arg0: i32) -> (i32, i32) {
    %c0_i32 = arith.constant 0 : i32
    %c0_i32_0 = arith.constant 0 : i32
    %c0_i32_1 = arith.constant 0 : i32
    return %c0_i32, %c0_i32_0 : i32, i32
  }
  func.func @transform_14(%arg0: i32) -> (i32, i32) {
    %c0_i32 = arith.constant 0 : i32
    %c0_i32_0 = arith.constant 0 : i32
    %c0_i32_1 = arith.constant 0 : i32
    return %c0_i32, %c0_i32_0 : i32, i32
  }
  func.func @transform_15(%arg0: i32) -> (i32, i32) {
    %c0_i32 = arith.constant 0 : i32
    %c0_i32_0 = arith.constant 0 : i32
    %c0_i32_1 = arith.constant 0 : i32
    return %c0_i32, %c0_i32_0 : i32, i32
  }
  func.func @transform_16(%arg0: i32) -> (i32, i32, i32) {
    %c0_i32 = arith.constant 0 : i32
    %c0_i32_0 = arith.constant 0 : i32
    %c0_i32_1 = arith.constant 0 : i32
    return %arg0, %c0_i32, %c0_i32_0 : i32, i32, i32
  }
}

</mosaic_0001>

<bundles_post_ra>
// kernel: enterpreneur_classifier_forward.1
= control target key start
LH: loop header
LB: loop body
LE: loop exit
PB: predicated region body
PF: predicated region fallthrough
CT: control target
= control target key end

     0   :  { %s3150_s0 = inlined_call_operand.vmem [shape: s32[2,8,1], index: 0, kind: input, shape index: {}]   ;;  %s3151_s1 = inlined_call_operand.vmem [shape: f32[2,1,8], index: 1, kind: input, shape index: {}]   ;;  %s3152_s2 = inlined_call_operand.vmem [shape: f32[128,32], index: 2, kind: input, shape index: {}]   ;;  %s3153_s3 = inlined_call_operand.vmem [shape: f32[8,32], index: 3, kind: input, shape index: {}]   ;;  %s3154_s4 = inlined_call_operand.vmem [shape: f32[2,32], index: 4, kind: input, shape index: {}]   ;;  %s3155_s5 = inlined_call_operand.vmem [shape: bf16[2,32,96], index: 5, kind: input, shape index: {}]   ;;  %s3156_s6 = inlined_call_operand.vmem [shape: f32[2,1,96], index: 6, kind: input, shape index: {}]   ;;  %s3157_s7 = inlined_call_operand.vmem [shape: bf16[2,2,16,32], index: 7, kind: input, shape index: {}]   ;;  %s3158_s8 = inlined_call_operand.vmem [shape: f32[2,6,32], index: 8, kind: input, shape index: {}]   ;;  %s3159_s9 = inlined_call_operand.vmem [shape: bf16[2,32,64], index: 9, kind: input, shape index: {}]   ;;  %s3160_s10 = inlined_call_operand.vmem [shape: f32[2,1,64], index: 10, kind: input, shape index: {}]   ;;  %s3161_s11 = inlined_call_operand.vmem [shape: bf16[2,64,32], index: 11, kind: input, shape index: {}]   ;;  %s3162_s12 = inlined_call_operand.vmem [shape: bf16[32,32], index: 12, kind: input, shape index: {}]   ;;  %s3163_s13 = inlined_call_operand.vmem [shape: f32[1,32], index: 13, kind: input, shape index: {}]   ;;  %s3164_s14 = inlined_call_operand.vmem [shape: bf16[32,128], index: 14, kind: input, shape index: {}]   ;;  %s3165_s15 = inlined_call_operand.vmem [shape: f32[1,128], index: 15, kind: input, shape index: {}]   ;;  %s3166_s16 = inlined_call_operand.hbm [shape: f32[2,1,128], index: 16, kind: output, shape index: {}]  }
   0x1   :  { %3173 = sst [smem:[#allocation11_spill]] %s3150_s0 }
   0x2   :  { %21 = vsyncpa [#allocation3], 0 }
   0x3   :  { %23 = vsyncpa [#allocation3 + $0x1], 0  ;;  %s2690_s21 = smov 0   ;;  %s2692_s22 = smov 0  }
   0x4   :  { %s2694_s23 = smov 0   ;;  %s2696_s24 = smov 0  }
   0x5 LB: > { %3174 = sst [smem:[#allocation5_spill]] %s2583_s21  ;;  %s2711_s25 = sadd.s32 4294967295, %s2595_s24   ;;  %s2595_s24 = sphi %s2696_s24, %s3186_s24   ;;  %s2591_s23 = sphi %s2694_s23, %s3188_s23   ;;  %s2587_s22 = sphi %s2692_s22, %s3190_s22   ;;  %s2583_s21 = sphi %s2690_s21, %s3189_s21  }
   0x6   : > { %3175 = sst [smem:[#allocation6_spill]] %s2591_s23  ;;  %s2098_s26 = sadd.s32 4294967294, %s2595_s24  }
   0x7   : > { %3176 = sst [smem:[#allocation7_spill]] %s2595_s24  ;;  %s2715_s27 = sadd.s32 1, %s2595_s24  }
   0x8   : > { %3177 = sst [smem:[#allocation8_spill]] %s2715_s27  ;;  %s382_s28 = sadd.s32 1, %s2591_s23 }
   0x9   : > { %s379_s29 = ssub.s32 %s2595_s24, %s2715_s27  ;;  %p392_p0 = scmp.ne.s32.totalorder %s2591_s23, %s2587_s22 }
   0xa   : > { %p380_p1 = scmp.eq.s32.totalorder %s379_s29, 0  ;;  %p393_p2 = scmp.eq.s32.totalorder %s2711_s25, 1 }
   0xb   : > { %p398_p3 = scmp.ne.s32.totalorder %s2587_s22, %s2583_s21  ;;  %p399_p4 = scmp.eq.s32.totalorder %s2098_s26, 1 }
   0xc   : > { %s2726_s30 = scalar_select %p380_p1, %s2591_s23, %s382_s28  }
   0xd   : > { %p2728_p5 = por %p393_p2, %p392_p0  ;;  %p2732_p6 = por %p399_p4, %p398_p3 }
   0xe   : > { %3178 = sst [smem:[#allocation9_spill]] %s2726_s30  ;;  %p2101_p7 = scmp.ge.s32.totalorder %s2595_s24, 1 }
   0xf   : > { %s3180_s17 = scalar_select %p2732_p6, 1, 0 }
  0x10   : > { %p472_p8 = scmp.lt.s32.totalorder %s2595_s24, 3 }
  0x11   : > { %3181 = sst [smem:[#allocation10_spill]] %s3180_s17 }
  0x12   : > { %p473_p9 = pnand %p2101_p7, %p472_p8 }
  0x13   : > { %p523_p10 = scmp.lt.s32.totalorder (!%p473_p9), %s2711_s25, 1  ;;  %s3182_s30 = sld [smem:[#allocation11_spill]] (!%p473_p9) }
  0x14   : > { %476 = sbr.rel (%p473_p9) target bundleno = 6156 (0x180c), region = 84  ;;  %s2601_s26 = smov (!%p473_p9), 80  }
  0x15   : > { %s2602_s29 = smov (!%p473_p9), 112   ;;  %s2603_s21 = smov (!%p473_p9), 96  }
  0x16   : > { %s2177_s20 = sshll.u32 (!%p473_p9), %s2711_s25, 4 }
  0x19   : > { %v555_v0 = vld [vmem:[%s3152_s2 + $0x78] sm:$0xff]  ;;  %v2597_v1 = vmov 0   ;;  %v2598_v2 = vmov 0.0   ;;  %v554_v3 = vld [vmem:[%s3152_s2 + $0x70] sm:$0xff]  ;;  %s2747_s28 = scalar_select %p523_p10, %s2711_s25, 1  ;;  %v553_v4 = vld [vmem:[%s3152_s2 + $0x68] sm:$0xff]  ;;  %v532_v19 = vlaneseq }
  0x1a   : > { %2474 = vset.pattern.permute.xlu0 %v2597_v1  ;;  %2249 = vmatprep.subr.mxu0 %v2598_v2  ;;  %vm2599_vm0 = vmmov 0   ;;  %v552_v5 = vld [vmem:[%s3152_s2 + $0x60] sm:$0xff]  ;;  %v551_v6 = vld [vmem:[%s3152_s2 + $0x58] sm:$0xff]  ;;  %v550_v8 = vld [vmem:[%s3152_s2 + $0x50] sm:$0xff]  ;;  %v2600_v22 = vmov 1.0   ;;  %vm628_vm2 = vcmask 261120  }
  0x1b   : > { %2250 = vmatpush3.msra.mxu0 %v555_v0  ;;  %2284 = vmatprep.subr.bf16.mxu1 %v2598_v2  ;;  %s2102_s19 = sshll.u32 %s2747_s28, 3  ;;  %v549_v9 = vld [vmem:[%s3152_s2 + $0x48] sm:$0xff]  ;;  %v548_v10 = vld [vmem:[%s3152_s2 + $0x40] sm:$0xff]  ;;  %v547_v11 = vld [vmem:[%s3152_s2 + $0x38] sm:$0xff]  ;;  %v2816_v20 = vand.u32 127, %v532_v19  ;;  %v2834_v38 = vshrl.u32 %v532_v19, 7  ;;  %s529_s17 = scalar_lea.vmem %s3151_s1, %s2747_s28 }
  0x1c   : > { %2251 = vmatprep.subr.mxu0 %v2598_v2  ;;  %2281 = vmatprep.mubr.msk.f32.mxu0 %vm2599_vm0, %v2598_v2  ;;  %s526_s23 = scalar_lea.vmem %s3182_s30, %s2102_s19  ;;  %v546_v12 = vld [vmem:[%s3152_s2 + $0x30] sm:$0xff]  ;;  %v545_v13 = vld [vmem:[%s3152_s2 + $0x28] sm:$0xff]  ;;  %v544_v14 = vld [vmem:[%s3152_s2 + $0x20] sm:$0xff]  ;;  %vm727_vm3 = vcmask 130048   ;;  %vm832_vm4 = vcmask 64512   ;;  %vm862_vm5 = vcmask 1043456  }
  0x1d   : > { %2252 = vmatpush3.msra.mxu0 %v554_v3  ;;  %2288 = vmatprep.mubr.msk.bf16.mxu1 %vm2599_vm0, %v2598_v2  ;;  %v531_v7 = vld [vmem:[%s526_s23] sm:$0xff]  ;;  %v543_v15 = vld [vmem:[%s3152_s2 + $0x18] sm:$0xff]  ;;  %v542_v16 = vld [vmem:[%s3152_s2 + $0x10] sm:$0xff]  ;;  %v2837_v39 = vsub.s32 0, %v2834_v38  ;;  %v2843_v41 = vsub.s32 1, %v2834_v38  ;;  %vm1202_vm6 = vcmask 523264  }
  0x1e   : > { %2253 = vmatprep.subr.mxu0 %v2598_v2  ;;  %535 = vperm.xlu0 %2474, %v531_v7   ;;  %v541_v17 = vld [vmem:[%s3152_s2 + $0x8] sm:$0xff]  ;;  %v540_v18 = vld [vmem:[%s3152_s2] sm:$0xff]  ;;  %vm2006_vm7 = vcmp.lt.s32.totalorder %v2816_v20, 3  ;;  %vm2008_vm8 = vcmask 1040384   ;;  %s521_s19 = sand.u32 1, %s2587_s22   ;;  %s2604_s23 = smov [#allocation2]  }
  0x1f   : > { %2254 = vmatpush3.msra.mxu0 %v553_v4  ;;  %v557_v23 = vld [vmem:[%s3153_s3] sm:$0xff]  ;;  %v2475_v33 = vld [vmem:[%s3155_s5 + $0x8] sm:$0xff]   ;;  %s522_s30 = scalar_lea.vmem [#allocation2], %s521_s19  ;;  %s2539_s24 = sshll.u32 %s2604_s23, 4  ;;  %s2540_s24 = int_to_ptr.vmem [resolvable:$false] %s2539_s24 }
  0x20   : > { %2255 = vmatprep.subr.mxu0 %v2598_v2  ;;  %2285 = vmatpush3.bf16.msra.mxu1 %v2475_v33  ;;  %v2476_v34 = vld [vmem:[%s3155_s5] sm:$0xff]   ;;  %s2034_s27 = sshll.u32 %s522_s30, 4  ;;  %s2541_s25 = scalar_lea.vmem %s2540_s24, 32  ;;  %s2035_s27 = int_to_ptr.vmem [resolvable:$true] %s2034_s27 }
  0x21   : > { %2256 = vmatpush3.msra.mxu0 %v552_v5  ;;  %2286 = vmatprep.subr.bf16.mxu1 %v2598_v2  ;;  %v556_v40 = vld [vmem:[%s3154_s4] sm:$0x3]  ;;  %s2535_s28 = scalar_lea.vmem %s2035_s27, 16  ;;  %p2542_p0 = scmp.lt.s32.totalorder %s2035_s27, %s2540_s24 }
  0x22   : > { %2257 = vmatprep.subr.mxu0 %v2598_v2  ;;  %v646_v42 = vrot.slane %v556_v40, %v2837_v39  ;;  %v651_v45 = vrot.slane %v556_v40, %v2843_v41  ;;  %v2105_v49 = vld [vmem:[%s3156_s6] ss:$0 sm:$0xff]  ;;  %p2536_p11 = scmp.ne.s32.totalorder %s2035_s27, %s2535_s28  ;;  %p2543_p1 = scmp.lt.s32.totalorder %s2541_s25, %s2535_s28 }
  0x23   : > { %2258 = vmatpush3.msra.mxu0 %v551_v6  ;;  %v2874_v61 = vld [vmem:[%s529_s17] ss:$0 sm:$0xff]  ;;  %s2022_s17 = scalar_lea.sflag [#allocation3], %s521_s19 }
  0x24   : > { %2259 = vmatprep.subr.mxu0 %v2598_v2  ;;  %2287 = vmatpush3.bf16.msra.mxu1 %v2476_v34  ;;  %p2537_p12 = pnand %p2536_p11, %p2728_p5  ;;  %p2544_p2 = por %p2543_p1, %p2542_p0 }
  0x25   : > { %2260 = vmatpush3.msra.mxu0 %v550_v8  ;;  %2292 = vmatprep.subr.bf16.mxu1 %v2598_v2 }
  0x26   : > { %2261 = vmatprep.subr.mxu0 %v2598_v2  ;;  %p2538_p13 = pneg %p2537_p12 }
  0x27   : > { %2262 = vmatpush3.msra.mxu0 %v549_v9 }
  0x28   : > { %2263 = vmatprep.subr.mxu0 %v2598_v2  ;;  %p2545_p3 = pnand %p2544_p2, %p2538_p13 }
  0x29   : > { %2264 = vmatpush3.msra.mxu0 %v548_v10 }
  0x2a   : > { %2265 = vmatprep.subr.mxu0 %v2598_v2 }
  0x2b   : > { %2266 = vmatpush3.msra.mxu0 %v547_v11 }
  0x2c   : > { %2267 = vmatprep.subr.mxu0 %v2598_v2 }
  0x2d   : > { %2268 = vmatpush3.msra.mxu0 %v546_v12 }
  0x2e   : > { %2269 = vmatprep.subr.mxu0 %v2598_v2 }
  0x2f   : > { %2270 = vmatpush3.msra.mxu0 %v545_v13 }
  0x30   : > { %2271 = vmatprep.subr.mxu0 %v2598_v2 }
  0x31   : > { %2272 = vmatpush3.msra.mxu0 %v544_v14 }
  0x32   : > { %2273 = vmatprep.subr.mxu0 %v2598_v2 }
  0x33   : > { %2274 = vmatpush3.msra.mxu0 %v543_v15 }
  0x34   : > { %2275 = vmatprep.subr.mxu0 %v2598_v2 }
  0x35   : > { %2276 = vmatpush3.msra.mxu0 %v542_v16 }
  0x36   : > { %2277 = vmatprep.subr.mxu0 %v2598_v2 }
  0x37   : > { %2278 = vmatpush3.msra.mxu0 %v541_v17 }
  0x38   : > { %2279 = vmatprep.subr.mxu0 %v2598_v2 }
  0x39   : > { %2280 = vmatpush3.msra.mxu0 %v540_v18 }
  0x3a   : > { %2310 = vmatprep.subr.bf16.mxu0 %v2598_v2 }
  0x99   : > { %v536_v21 = vpop.permute.xlu0 %535 }
  0x9a   : > { %vm537_vm1 = vcmp.eq.s32.totalorder %v2816_v20, %v536_v21 }
  0x9b   : > { %2282 = vmatmul.mubr.msk.f32.vlgmr.msra.gmra.mxu0 %vm537_vm1, %v2600_v22 }
  0x9c   : > { %2312 = vmatprep.mubr.msk.bf16.mxu0 %vm2599_vm0, %v2598_v2 }
 0x15b   : > { %v624_v24 = vpop.f32.mrf.mxu0 }
 0x15c   : > { %v625_v25 = vadd.f32 %v624_v24, %v557_v23 }
 0x15d   : > { %v2283_v26 = vpop.f32.mrf.mxu0 }
 0x15e   : > { %v629_v27 = vsel %vm628_vm2, %v625_v25, 0.0 }
 0x15f   : > { %630 = vadd.xlane.f32.xlu0 %v629_v27 }
 0x1e8   : > { %v631_v28 = vpop.xlane.xlu0 %630 }
 0x1e9   : > { %v633_v29 = vmul.f32 0.03125, %v631_v28 }
 0x1eb   : > { %v634_v30 = vsub.f32 %v625_v25, %v633_v29 }
 0x1ed   : > { %v635_v31 = vmul.f32 %v634_v30, %v634_v30 }
 0x1ef   : > { %v636_v32 = vsel %vm628_vm2, %v635_v31, 0.0 }
 0x1f0   : > { %637 = vadd.xlane.f32.xlu1 %v636_v32 }
 0x279   : > { %v638_v35 = vpop.xlane.xlu1 %637 }
 0x27a   : > { %v639_v36 = vmul.f32 0.03125, %v638_v35 }
 0x27c   : > { %v640_v37 = vadd.f32 1e-12, %v639_v36  ;;  %v2477_v36 = vld [vmem:[%s3157_s7] sm:$0xff]  }
 0x27e   : > { %2499 = vrsqrt.f32 %v640_v37  ;;  %v2478_v37 = vld [vmem:[%s3157_s7 + $0x8] sm:$0xff]  }
 0x28b   : > { %v2500_v43 = vpop.eup %2499 }
 0x28c   : > { %v642_v44 = vmul.f32 %v2500_v43, %v634_v30 }
 0x28e   : > { %v647_v46 = vmul.f32 %v646_v42, %v642_v44 }
 0x290   : > { %v2847_v47 = vadd.f32 %v651_v45, %v647_v46 }
 0x292   : > { %v654_v48 = vpack.c.bf16 %v2847_v47, %v2847_v47 }
 0x294   : > { %2289 = vmatmul.mubr.msk.bf16.vlgmr.msra.gmra.mxu1 %vm628_vm2, %v654_v48 }
 0x295   : > { %2294 = vmatprep.mubr.msk.bf16.mxu1 %vm2599_vm0, %v2598_v2 }
 0x354   : > { %v715_v50 = vpop.f32.mrf.mxu1 }
 0x355   : > { %v716_v51 = vadd.f32 %v2105_v49, %v715_v50 }
 0x356   : > { %v2290_v52 = vpop.f32.mrf.mxu1 }
 0x357   : > { %v721_v53 = vpack.c.bf16 %v716_v51, %v716_v51 }
 0x358   : > { %v718_v54 = vpop.f32.mrf.mxu1 }
 0x359   : > { %723 = vrot.lane.b32.xlu1 %v721_v53, %s2601_s26 }
 0x35a   : > { %v2291_v55 = vpop.f32.mrf.mxu1 }
 0x35d   : > { %725 = vrot.lane.b32.xlu1 %v721_v53, %s2602_s29 }
 0x3cb   : > { %v724_v56 = vpop.permute.xlu1 %723 }
 0x3cc   : > { %774 = vrot.lane.b32.xlu1 %v724_v56, %s2602_s29 }
 0x3cf   : > { %v726_v57 = vpop.permute.xlu1 %725 }
 0x3d0   : > { %v732_v58 = vsel %vm727_vm3, %v726_v57, 0 }
 0x3d1   : > { %2293 = vmatpush3.bf16.xpose.msra.mxu1 %v732_v58 }
 0x3d2   : > { %2298 = vmatprep.subr.bf16.mxu1 %v2598_v2 }
 0x3d8   : > { %2295 = vmatmul.mubr.msk.bf16.vlgmr.msra.gmra.mxu1 %vm727_vm3, %v721_v53 }
 0x3d9   : > { %2300 = vmatprep.mubr.msk.bf16.mxu1 %vm2599_vm0, %v2598_v2 }
 0x43e   : > { %v775_v59 = vpop.permute.xlu1 %774 }
 0x43f   : > { %v780_v60 = vsel %vm727_vm3, %v775_v59, 0 }
 0x440   : > { %2299 = vmatpush3.bf16.xpose.msra.mxu1 %v780_v60 }
 0x441   : > { %2304 = vmatprep.subr.bf16.mxu1 %v2598_v2 }
 0x447   : > { %2301 = vmatmul.mubr.msk.bf16.vlgmr.msra.gmra.mxu1 %vm727_vm3, %v724_v56 }
 0x448   : > { %2306 = vmatprep.mubr.msk.bf16.mxu1 %vm2599_vm0, %v2598_v2 }
 0x498   : > { %v768_v62 = vpop.f32.mrf.mxu1 }
 0x499   : > { %v822_v63 = vmul.f32 0.25, %v768_v62 }
 0x49a   : > { %v2296_v0 = vpop.f32.mrf.mxu1 }
 0x49b   : > { %v830_v1 = vadd.f32 %v2874_v61, %v822_v63 }
 0x49c   : > { %v771_v3 = vpop.f32.mrf.mxu1 }
 0x49d   : > { %v833_v4 = vsel %vm832_vm4, %v830_v1, -inf }
 0x49e   : > { %834 = vmax.xlane.f32.xlu1 %v833_v4  ;;  %v2297_v5 = vpop.f32.mrf.mxu1 }
 0x4af   : > { %906 = vrot.lane.b32.xlu1 %v724_v56, %s2603_s21  ;;  %v2911_v56 = vld [vmem:[%s3158_s8] sm:$0x3f] }
 0x4b0   : > { %v1063_v57 = vrot.slane %v2911_v56, %v2837_v39 }
 0x507   : > { %v816_v6 = vpop.f32.mrf.mxu1 }
 0x508   : > { %v823_v7 = vmul.f32 0.25, %v816_v6 }
 0x509   : > { %v2302_v8 = vpop.f32.mrf.mxu1 }
 0x50a   : > { %v831_v9 = vadd.f32 %v2874_v61, %v823_v7 }
 0x50b   : > { %v819_v10 = vpop.f32.mrf.mxu1 }
 0x50c   : > { %v836_v11 = vsel %vm832_vm4, %v831_v9, -inf }
 0x50d   : > { %837 = vmax.xlane.f32.xlu0 %v836_v11  ;;  %v2303_v12 = vpop.f32.mrf.mxu1 }
 0x527   : > { %v835_v13 = vpop.xlane.xlu1 %834 }
 0x528   : > { %v839_v14 = vsub.f32 %v830_v1, %v835_v13  ;;  %v1086_v13 = vsub.s32 2, %v2834_v38 }
 0x52a   : > { %v841_v15 = vmul.f32 1.442695, %v839_v14  ;;  %v1082_v14 = vrot.slane %v2911_v56, %v2843_v41 }
 0x52b   : > { %v907_v16 = vpop.permute.xlu1 %906 }
 0x52c   : > { %2501 = vpow2.f32 %v841_v15  ;;  %v912_v17 = vsel %vm862_vm5, %v907_v16, 0 }
 0x52d   : > { %2311 = vmatpush3.bf16.msra.mxu0 %v912_v17  ;;  %v1087_v17 = vrot.slane %v2911_v56, %v1086_v13 }
 0x52e   : > { %2322 = vmatprep.subr.bf16.mxu0 %v2598_v2 }
 0x539   : > { %v2502_v18 = vpop.eup %2501 }
 0x53a   : > { %v845_v19 = vsel %vm832_vm4, %v2502_v18, 0.0 }
 0x53b   : > { %846 = vadd.xlane.f32.xlu0 %v845_v19 }
 0x596   : > { %v838_v21 = vpop.xlane.xlu0 %837 }
 0x597   : > { %v840_v22 = vsub.f32 %v831_v9, %v838_v21  ;;  %v2479_v9 = vld [vmem:[%s3159_s9 + $0x8] sm:$0xff]  }
 0x599   : > { %v843_v23 = vmul.f32 1.442695, %v840_v22  ;;  %v2481_v22 = vld [vmem:[%s3161_s11 + $0x18] sm:$0xff]  }
 0x59b   : > { %2503 = vpow2.f32 %v843_v23  ;;  %v2482_v23 = vld [vmem:[%s3161_s11 + $0x10] sm:$0xff]  }
 0x5a8   : > { %v2504_v24 = vpop.eup %2503 }
 0x5a9   : > { %v848_v25 = vsel %vm832_vm4, %v2504_v24, 0.0 }
 0x5aa   : > { %849 = vadd.xlane.f32.xlu0 %v848_v25  ;;  %v2484_v25 = vld [vmem:[%s3161_s11] sm:$0xff]  }
 0x5c0   : > { %857 = vrot.lane.b32.xlu0 %v721_v53, %s2603_s21 }
 0x5c4   : > { %v847_v26 = vpop.xlane.xlu0 %846 }
 0x5c5   : > { %2505 = vrcp.f32 %v847_v26  ;;  %v2118_v26 = vld [vmem:[%s3160_s10] ss:$0 sm:$0xff] }
 0x5d2   : > { %v2506_v27 = vpop.eup %2505 }
 0x5d3   : > { %v852_v29 = vmul.f32 %v2506_v27, %v2502_v18 }
 0x5d5   : > { %v855_v32 = vpack.c.bf16 %v852_v29, %v852_v29 }
 0x633   : > { %v850_v28 = vpop.xlane.xlu0 %849 }
 0x634   : > { %2507 = vrcp.f32 %v850_v28 }
 0x637   : > { %v858_v30 = vpop.permute.xlu0 %857 }
 0x638   : > { %v864_v31 = vsel %vm862_vm5, %v858_v30, 0 }
 0x639   : > { %2305 = vmatpush3.bf16.msra.mxu1 %v864_v31 }
 0x63a   : > { %2316 = vmatprep.subr.bf16.mxu1 %v2598_v2 }
 0x63c   : > { %2307 = vmatmul.mubr.msk.bf16.vlgmr.msra.gmra.mxu1 %vm832_vm4, %v855_v32 }
 0x63d   : > { %2318 = vmatprep.mubr.msk.bf16.mxu1 %vm2599_vm0, %v2598_v2  ;;  %2317 = vmatpush3.bf16.msra.mxu1 %v2477_v36 }
 0x63e   : > { %2328 = vmatprep.subr.bf16.mxu1 %v2598_v2 }
 0x641   : > { %v2508_v33 = vpop.eup %2507 }
 0x642   : > { %v854_v34 = vmul.f32 %v2508_v33, %v2504_v24  ;;  %v2483_v24 = vld [vmem:[%s3161_s11 + $0x8] sm:$0xff]  }
 0x644   : > { %v856_v35 = vpack.c.bf16 %v854_v34, %v854_v34 }
 0x646   : > { %2313 = vmatmul.mubr.msk.bf16.vlgmr.msra.gmra.mxu0 %vm832_vm4, %v856_v35 }
 0x647   : > { %2324 = vmatprep.mubr.msk.bf16.mxu0 %vm2599_vm0, %v2598_v2  ;;  %2323 = vmatpush3.bf16.msra.mxu0 %v2478_v37 }
 0x648   : > { %2336 = vmatprep.subr.bf16.mxu0 %v2598_v2 }
 0x6fc   : > { %v900_v40 = vpop.f32.mrf.mxu1 }
 0x6fd   : > { %v954_v42 = vpack.c.bf16 %v900_v40, %v900_v40 }
 0x6fe   : > { %v2308_v43 = vpop.f32.mrf.mxu1 }
 0x6ff   : > { %2319 = vmatmul.mubr.msk.bf16.vlgmr.msra.gmra.mxu1 %vm727_vm3, %v954_v42 }
 0x700   : > { %v903_v44 = vpop.f32.mrf.mxu1  ;;  %2332 = vmatprep.mubr.msk.bf16.mxu1 %vm2599_vm0, %v2598_v2  ;;  %2329 = vmatpush3.bf16.msra.mxu1 %v2479_v9 }
 0x701   : > { %2330 = vmatprep.subr.bf16.mxu1 %v2598_v2 }
 0x702   : > { %v2309_v45 = vpop.f32.mrf.mxu1 }
 0x703   : > { %v1176_v45 = vsub.s32 3, %v2834_v38 }
 0x706   : > { %v948_v46 = vpop.f32.mrf.mxu0 }
 0x707   : > { %v955_v48 = vpack.c.bf16 %v948_v46, %v948_v46  ;;  %v1177_v46 = vrot.slane %v2911_v56, %v1176_v45 }
 0x708   : > { %v2314_v49 = vpop.f32.mrf.mxu0 }
 0x709   : > { %2325 = vmatmul.mubr.msk.bf16.vlgmr.msra.gmra.mxu0 %vm727_vm3, %v955_v48 }
 0x70a   : > { %v951_v50 = vpop.f32.mrf.mxu0  ;;  %2344 = vmatprep.mubr.msk.bf16.mxu0 %vm2599_vm0, %v2598_v2  ;;  %2337 = vmatpush3.bf16.msra.mxu0 %v2481_v22 }
 0x70b   : > { %2338 = vmatprep.subr.bf16.mxu0 %v2598_v2 }
 0x70c   : > { %v2315_v51 = vpop.f32.mrf.mxu0 }
 0x70e   : > { %2339 = vmatpush3.bf16.msra.mxu0 %v2482_v23 }
 0x70f   : > { %2340 = vmatprep.subr.bf16.mxu0 %v2598_v2 }
 0x712   : > { %2341 = vmatpush3.bf16.msra.mxu0 %v2483_v24 }
 0x713   : > { %2342 = vmatprep.subr.bf16.mxu0 %v2598_v2 }
 0x716   : > { %2343 = vmatpush3.bf16.msra.mxu0 %v2484_v25 }
 0x717   : > { %2362 = vmatprep.subr.bf16.mxu0 %v2598_v2 }
 0x7bf   : > { %v1003_v52 = vpop.f32.mrf.mxu1 }
 0x7c1   : > { %v2320_v53 = vpop.f32.mrf.mxu1 }
 0x7c3   : > { %v1006_v54 = vpop.f32.mrf.mxu1 }
 0x7c5   : > { %v2321_v55 = vpop.f32.mrf.mxu1 }
 0x7c9   : > { %v1052_v58 = vpop.f32.mrf.mxu0 }
 0x7ca   : > { %v1059_v59 = vadd.f32 %v1052_v58, %v1003_v52 }
 0x7cb   : > { %v2326_v60 = vpop.f32.mrf.mxu0 }
 0x7cc   : > { %v1064_v62 = vadd.f32 %v1063_v57, %v1059_v59 }
 0x7cd   : > { %v1055_v63 = vpop.f32.mrf.mxu0 }
 0x7ce   : > { %v1065_v0 = vadd.f32 %v1064_v62, %v2847_v47  ;;  %v2480_v47 = vld [vmem:[%s3159_s9] sm:$0xff]   ;;  %v2485_v62 = vld [vmem:[%s3155_s5 + $0x18] sm:$0xff]   ;;  %v2486_v63 = vld [vmem:[%s3155_s5 + $0x10] sm:$0xff]  }
 0x7cf   : > { %v2327_v1 = vpop.f32.mrf.mxu0  ;;  %2331 = vmatpush3.bf16.msra.mxu1 %v2480_v47 }
 0x7d0   : > { %v1066_v3 = vsel %vm628_vm2, %v1065_v0, 0.0  ;;  %2348 = vmatprep.subr.bf16.mxu1 %v2598_v2 }
 0x7d1   : > { %1067 = vadd.xlane.f32.xlu0 %v1066_v3 }
 0x85a   : > { %v1068_v4 = vpop.xlane.xlu0 %1067 }
 0x85b   : > { %v1069_v5 = vmul.f32 0.03125, %v1068_v4  ;;  %v1262_v4 = vsub.s32 4, %v2834_v38 }
 0x85d   : > { %v1070_v6 = vsub.f32 %v1065_v0, %v1069_v5  ;;  %v1267_v5 = vsub.s32 5, %v2834_v38  ;;  %v2498_v38 = vld [vmem:[%s3164_s14] sm:$0xff]  }
 0x85f   : > { %v1071_v7 = vmul.f32 %v1070_v6, %v1070_v6  ;;  %v1268_v9 = vrot.slane %v2911_v56, %v1267_v5 }
 0x861   : > { %v1072_v8 = vsel %vm628_vm2, %v1071_v7, 0.0 }
 0x862   : > { %1073 = vadd.xlane.f32.xlu1 %v1072_v8 }
 0x8eb   : > { %v1074_v10 = vpop.xlane.xlu1 %1073 }
 0x8ec   : > { %v1075_v11 = vmul.f32 0.03125, %v1074_v10 }
 0x8ee   : > { %v1076_v12 = vadd.f32 1e-12, %v1075_v11 }
 0x8f0   : > { %2509 = vrsqrt.f32 %v1076_v12  ;;  %v2132_v12 = vld [vmem:[%s3156_s6 + $0x1] ss:$0 sm:$0xff] }
 0x8fd   : > { %v2510_v15 = vpop.eup %2509 }
 0x8fe   : > { %v1078_v16 = vmul.f32 %v2510_v15, %v1070_v6  ;;  %v1263_v6 = vrot.slane %v2911_v56, %v1262_v4 }
 0x900   : > { %v1083_v18 = vmul.f32 %v1082_v14, %v1078_v16 }
 0x902   : > { %v1088_v19 = vadd.f32 %v1087_v17, %v1083_v18 }
 0x904   : > { %v1089_v21 = vpack.c.bf16 %v1088_v19, %v1088_v19 }
 0x906   : > { %2333 = vmatmul.mubr.msk.bf16.vlgmr.msra.gmra.mxu1 %vm628_vm2, %v1089_v21 }
 0x907   : > { %2352 = vmatprep.mubr.msk.bf16.mxu1 %vm2599_vm0, %v2598_v2  ;;  %2349 = vmatpush3.bf16.msra.mxu1 %v2485_v62 }
 0x908   : > { %2350 = vmatprep.subr.bf16.mxu1 %v2598_v2 }
 0x90b   : > { %2351 = vmatpush3.bf16.msra.mxu1 %v2486_v63 }
 0x90c   : > { %2356 = vmatprep.subr.bf16.mxu1 %v2598_v2 }
 0x9c6   : > { %v1150_v27 = vpop.f32.mrf.mxu1 }
 0x9c7   : > { %v1151_v28 = vadd.f32 %v2118_v26, %v1150_v27 }
 0x9c8   : > { %v2334_v29 = vpop.f32.mrf.mxu1 }
 0x9c9   : > { %v1157_v30 = vmul.f32 0.044715, %v1151_v28  ;;  %v1156_v40 = vmul.f32 0.5, %v1151_v28 }
 0x9ca   : > { %v1153_v31 = vpop.f32.mrf.mxu1 }
 0x9cb   : > { %v1158_v32 = vmul.f32 %v1157_v30, %v1151_v28 }
 0x9cc   : > { %v2335_v33 = vpop.f32.mrf.mxu1 }
 0x9cd   : > { %v1159_v34 = vmul.f32 %v1158_v32, %v1151_v28 }
 0x9cf   : > { %v1160_v35 = vadd.f32 %v1159_v34, %v1151_v28 }
 0x9d1   : > { %v1161_v36 = vmul.f32 0.7978846, %v1160_v35 }
 0x9d3   : > { %2511 = vtanh.f32 %v1161_v36 }
 0x9e0   : > { %v2512_v37 = vpop.eup %2511 }
 0x9e1   : > { %v1163_v42 = vadd.f32 1.0, %v2512_v37 }
 0x9e3   : > { %v1164_v43 = vmul.f32 %v1163_v42, %v1156_v40 }
 0x9e5   : > { %v1165_v44 = vpack.c.bf16 %v1164_v43, %v1164_v43 }
 0x9e7   : > { %2345 = vmatmul.mubr.msk.bf16.vlgmr.msra.gmra.mxu0 %vm1202_vm6, %v1165_v44 }
 0x9e8   : > { %2364 = vmatprep.mubr.msk.bf16.mxu0 %vm2599_vm0, %v2598_v2 }
 0xaa7   : > { %v1240_v48 = vpop.f32.mrf.mxu0 }
 0xaa8   : > { %v1241_v49 = vadd.f32 %v1240_v48, %v1177_v46 }
 0xaa9   : > { %v2346_v50 = vpop.f32.mrf.mxu0 }
 0xaaa   : > { %v1246_v51 = vadd.f32 %v1241_v49, %v1088_v19 }
 0xaab   : > { %v1243_v52 = vpop.f32.mrf.mxu0 }
 0xaac   : > { %v1247_v53 = vsel %vm628_vm2, %v1246_v51, 0.0 }
 0xaad   : > { %1248 = vadd.xlane.f32.xlu0 %v1247_v53  ;;  %v2347_v54 = vpop.f32.mrf.mxu0 }
 0xb36   : > { %v1249_v55 = vpop.xlane.xlu0 %1248 }
 0xb37   : > { %v1250_v57 = vmul.f32 0.03125, %v1249_v55 }
 0xb39   : > { %v1251_v58 = vsub.f32 %v1246_v51, %v1250_v57 }
 0xb3b   : > { %v1252_v59 = vmul.f32 %v1251_v58, %v1251_v58 }
 0xb3d   : > { %v1253_v60 = vsel %vm628_vm2, %v1252_v59, 0.0 }
 0xb3e   : > { %1254 = vadd.xlane.f32.xlu0 %v1253_v60  ;;  %v2487_v60 = vld [vmem:[%s3157_s7 + $0x10] sm:$0xff]  }
 0xbc7   : > { %v1255_v0 = vpop.xlane.xlu0 %1254 }
 0xbc8   : > { %v1256_v1 = vmul.f32 0.03125, %v1255_v0 }
 0xbca   : > { %v1257_v3 = vadd.f32 1e-12, %v1256_v1 }
 0xbcc   : > { %2513 = vrsqrt.f32 %v1257_v3 }
 0xbd9   : > { %v2514_v7 = vpop.eup %2513 }
 0xbda   : > { %v1259_v8 = vmul.f32 %v2514_v7, %v1251_v58 }
 0xbdc   : > { %v1264_v47 = vmul.f32 %v1263_v6, %v1259_v8  ;;  %v2488_v6 = vld [vmem:[%s3157_s7 + $0x18] sm:$0xff]  }
 0xbde   : > { %v2979_v10 = vadd.f32 %v1268_v9, %v1264_v47 }
 0xbe0   : > { %v1270_v11 = vpack.c.bf16 %v2979_v10, %v2979_v10 }
 0xbe2   : > { %2353 = vmatmul.mubr.msk.bf16.vlgmr.msra.gmra.mxu1 %vm628_vm2, %v1270_v11 }
 0xbe3   : > { %2358 = vmatprep.mubr.msk.bf16.mxu1 %vm2599_vm0, %v2598_v2 }
 0xca2   : > { %v1333_v14 = vpop.f32.mrf.mxu1 }
 0xca3   : > { %v1334_v15 = vadd.f32 %v2132_v12, %v1333_v14 }
 0xca4   : > { %v2354_v16 = vpop.f32.mrf.mxu1 }
 0xca5   : > { %v1339_v17 = vpack.c.bf16 %v1334_v15, %v1334_v15 }
 0xca6   : > { %v1336_v56 = vpop.f32.mrf.mxu1 }
 0xca7   : > { %1343 = vrot.lane.b32.xlu1 %v1339_v17, %s2602_s29  ;;  %1341 = vrot.lane.b32.xlu0 %v1339_v17, %s2601_s26 }
 0xca8   : > { %v2355_v18 = vpop.f32.mrf.mxu1 }
 0xd19   : > { %v1344_v19 = vpop.permute.xlu1 %1343  ;;  %v1342_v21 = vpop.permute.xlu0 %1341 }
 0xd1a   : > { %v1349_v22 = vsel %vm727_vm3, %v1344_v19, 0  ;;  %1391 = vrot.lane.b32.xlu0 %v1342_v21, %s2602_s29 }
 0xd1b   : > { %2357 = vmatpush3.bf16.xpose.msra.mxu1 %v1349_v22 }
 0xd1c   : > { %2368 = vmatprep.subr.bf16.mxu1 %v2598_v2 }
 0xd22   : > { %2359 = vmatmul.mubr.msk.bf16.vlgmr.msra.gmra.mxu1 %vm727_vm3, %v1339_v17 }
 0xd23   : > { %2370 = vmatprep.mubr.msk.bf16.mxu1 %vm2599_vm0, %v2598_v2 }
 0xd8c   : > { %v1392_v23 = vpop.permute.xlu0 %1391 }
 0xd8d   : > { %v1397_v24 = vsel %vm727_vm3, %v1392_v23, 0  ;;  %v3037_v23 = vld [vmem:[%s3158_s8 + $0x8] sm:$0x3f] }
 0xd8e   : > { %2363 = vmatpush3.bf16.xpose.msra.mxu0 %v1397_v24  ;;  %v1674_v24 = vrot.slane %v3037_v23, %v2837_v39  ;;  %v2489_v39 = vld [vmem:[%s3159_s9 + $0x18] sm:$0xff]  }
 0xd8f   : > { %2374 = vmatprep.subr.bf16.mxu0 %v2598_v2 }
 0xd95   : > { %2365 = vmatmul.mubr.msk.bf16.vlgmr.msra.gmra.mxu0 %vm727_vm3, %v1342_v21 }
 0xd96   : > { %2376 = vmatprep.mubr.msk.bf16.mxu0 %vm2599_vm0, %v2598_v2 }
 0xde2   : > { %v1385_v25 = vpop.f32.mrf.mxu1 }
 0xde3   : > { %v1439_v26 = vmul.f32 0.25, %v1385_v25 }
 0xde4   : > { %v2360_v27 = vpop.f32.mrf.mxu1 }
 0xde5   : > { %v1441_v28 = vadd.f32 %v2874_v61, %v1439_v26 }
 0xde6   : > { %v1388_v29 = vpop.f32.mrf.mxu1 }
 0xde7   : > { %v1443_v30 = vsel %vm832_vm4, %v1441_v28, -inf }
 0xde8   : > { %1444 = vmax.xlane.f32.xlu0 %v1443_v30  ;;  %v2361_v31 = vpop.f32.mrf.mxu1 }
 0xe55   : > { %v1433_v32 = vpop.f32.mrf.mxu0 }
 0xe56   : > { %v1440_v33 = vmul.f32 0.25, %v1433_v32 }
 0xe57   : > { %v2366_v34 = vpop.f32.mrf.mxu0 }
 0xe58   : > { %v1442_v35 = vadd.f32 %v2874_v61, %v1440_v33 }
 0xe59   : > { %v1436_v36 = vpop.f32.mrf.mxu0 }
 0xe5a   : > { %v1446_v37 = vsel %vm832_vm4, %v1442_v35, -inf }
 0xe5b   : > { %1447 = vmax.xlane.f32.xlu1 %v1446_v37  ;;  %v2367_v40 = vpop.f32.mrf.mxu0 }
 0xe6c   : > { %1467 = vrot.lane.b32.xlu1 %v1339_v17, %s2603_s21 }
 0xe71   : > { %v1445_v42 = vpop.xlane.xlu0 %1444 }
 0xe72   : > { %v1449_v43 = vsub.f32 %v1441_v28, %v1445_v42 }
 0xe74   : > { %v1451_v44 = vmul.f32 1.442695, %v1449_v43 }
 0xe76   : > { %2515 = vpow2.f32 %v1451_v44  ;;  %v1693_v44 = vrot.slane %v3037_v23, %v2843_v41  ;;  %v2492_v41 = vld [vmem:[%s3161_s11 + $0x30] sm:$0xff]  }
 0xe83   : > { %v2516_v46 = vpop.eup %2515 }
 0xe84   : > { %v1455_v48 = vsel %vm832_vm4, %v2516_v46, 0.0 }
 0xe85   : > { %1456 = vadd.xlane.f32.xlu0 %v1455_v48 }
 0xee4   : > { %v1448_v49 = vpop.xlane.xlu1 %1447 }
 0xee5   : > { %v1450_v50 = vsub.f32 %v1442_v35, %v1448_v49  ;;  %v1698_v49 = vrot.slane %v3037_v23, %v1086_v13  ;;  %v2493_v13 = vld [vmem:[%s3161_s11 + $0x28] sm:$0xff]  }
 0xee7   : > { %v1453_v51 = vmul.f32 1.442695, %v1450_v50 }
 0xee8   : > { %v1468_v52 = vpop.permute.xlu1 %1467 }
 0xee9   : > { %2517 = vpow2.f32 %v1453_v51  ;;  %v1473_v61 = vsel %vm862_vm5, %v1468_v52, 0 }
 0xeea   : > { %2369 = vmatpush3.bf16.msra.mxu1 %v1473_v61  ;;  %v2491_v61 = vld [vmem:[%s3161_s11 + $0x38] sm:$0xff]  }
 0xeeb   : > { %2380 = vmatprep.subr.bf16.mxu1 %v2598_v2 }
 0xef6   : > { %v2518_v53 = vpop.eup %2517 }
 0xef7   : > { %v1458_v54 = vsel %vm832_vm4, %v2518_v53, 0.0 }
 0xef8   : > { %1459 = vadd.xlane.f32.xlu0 %v1458_v54  ;;  %v2154_v54 = vld [vmem:[%s3160_s10 + $0x1] ss:$0 sm:$0xff] }
 0xf0e   : > { %v1457_v55 = vpop.xlane.xlu0 %1456  ;;  %1515 = vrot.lane.b32.xlu0 %v1342_v21, %s2603_s21  ;;  %s2032_s21 = scalar_lea.hbm %s3166_s16, %s2177_s20 }
 0xf0f   : > { %2519 = vrcp.f32 %v1457_v55 }
 0xf1c   : > { %v2520_v57 = vpop.eup %2519 }
 0xf1d   : > { %v1462_v58 = vmul.f32 %v2520_v57, %v2516_v46 }
 0xf1f   : > { %v1465_v59 = vpack.c.bf16 %v1462_v58, %v1462_v58 }
 0xf21   : > { %2371 = vmatmul.mubr.msk.bf16.vlgmr.msra.gmra.mxu1 %vm832_vm4, %v1465_v59 }
 0xf22   : > { %2382 = vmatprep.mubr.msk.bf16.mxu1 %vm2599_vm0, %v2598_v2  ;;  %2381 = vmatpush3.bf16.msra.mxu1 %v2487_v60 }
 0xf23   : > { %2392 = vmatprep.subr.bf16.mxu1 %v2598_v2 }
 0xf81   : > { %v1460_v62 = vpop.xlane.xlu0 %1459 }
 0xf82   : > { %2521 = vrcp.f32 %v1460_v62 }
 0xf85   : > { %v1516_v63 = vpop.permute.xlu0 %1515 }
 0xf86   : > { %v1521_v0 = vsel %vm862_vm5, %v1516_v63, 0 }
 0xf87   : > { %2375 = vmatpush3.bf16.msra.mxu0 %v1521_v0 }
 0xf88   : > { %2386 = vmatprep.subr.bf16.mxu0 %v2598_v2 }
 0xf8f   : > { %v2522_v1 = vpop.eup %2521 }
 0xf90   : > { %v1464_v3 = vmul.f32 %v2522_v1, %v2518_v53  ;;  %v2494_v53 = vld [vmem:[%s3161_s11 + $0x20] sm:$0xff]  }
 0xf92   : > { %v1466_v7 = vpack.c.bf16 %v1464_v3, %v1464_v3 }
 0xf94   : > { %2377 = vmatmul.mubr.msk.bf16.vlgmr.msra.gmra.mxu0 %vm832_vm4, %v1466_v7 }
 0xf95   : > { %2387 = vmatpush3.bf16.msra.mxu0 %v2488_v6  ;;  %2388 = vmatprep.mubr.msk.bf16.mxu0 %vm2599_vm0, %v2598_v2 }
 0xf96   : > { %2400 = vmatprep.subr.bf16.mxu0 %v2598_v2 }
 0xfe1   : > { %v1509_v8 = vpop.f32.mrf.mxu1 }
 0xfe2   : > { %v1563_v9 = vpack.c.bf16 %v1509_v8, %v1509_v8 }
 0xfe3   : > { %v2372_v47 = vpop.f32.mrf.mxu1 }
 0xfe4   : > { %2383 = vmatmul.mubr.msk.bf16.vlgmr.msra.gmra.mxu1 %vm727_vm3, %v1563_v9 }
 0xfe5   : > { %v1512_v11 = vpop.f32.mrf.mxu1  ;;  %2396 = vmatprep.mubr.msk.bf16.mxu1 %vm2599_vm0, %v2598_v2  ;;  %2393 = vmatpush3.bf16.msra.mxu1 %v2489_v39 }
 0xfe6   : > { %2394 = vmatprep.subr.bf16.mxu1 %v2598_v2  ;;  %v1791_v11 = vrot.slane %v3037_v23, %v1176_v45  ;;  %v2495_v45 = vld [vmem:[%s3162_s12 + $0x8] sm:$0xff]  }
 0xfe7   : > { %v2373_v12 = vpop.f32.mrf.mxu1 }
0x1054   : > { %v1557_v14 = vpop.f32.mrf.mxu0 }
0x1055   : > { %v1564_v15 = vpack.c.bf16 %v1557_v14, %v1557_v14 }
0x1056   : > { %v2378_v16 = vpop.f32.mrf.mxu0 }
0x1057   : > { %2389 = vmatmul.mubr.msk.bf16.vlgmr.msra.gmra.mxu0 %vm727_vm3, %v1564_v15 }
0x1058   : > { %v1560_v17 = vpop.f32.mrf.mxu0  ;;  %2408 = vmatprep.mubr.msk.bf16.mxu0 %vm2599_vm0, %v2598_v2  ;;  %2401 = vmatpush3.bf16.msra.mxu0 %v2491_v61 }
0x1059   : > { %2402 = vmatprep.subr.bf16.mxu0 %v2598_v2 }
0x105a   : > { %v2379_v56 = vpop.f32.mrf.mxu0 }
0x105c   : > { %2403 = vmatpush3.bf16.msra.mxu0 %v2492_v41 }
0x105d   : > { %2404 = vmatprep.subr.bf16.mxu0 %v2598_v2 }
0x1060   : > { %2405 = vmatpush3.bf16.msra.mxu0 %v2493_v13 }
0x1061   : > { %2406 = vmatprep.subr.bf16.mxu0 %v2598_v2 }
0x1064   : > { %2407 = vmatpush3.bf16.msra.mxu0 %v2494_v53 }
0x10a4   : > { %v1613_v18 = vpop.f32.mrf.mxu1 }
0x10a6   : > { %v2384_v19 = vpop.f32.mrf.mxu1 }
0x10a8   : > { %v1616_v21 = vpop.f32.mrf.mxu1 }
0x10aa   : > { %v2385_v22 = vpop.f32.mrf.mxu1 }
0x1117   : > { %v1662_v25 = vpop.f32.mrf.mxu0 }
0x1118   : > { %v1670_v26 = vadd.f32 %v1662_v25, %v1613_v18 }
0x1119   : > { %v2390_v27 = vpop.f32.mrf.mxu0 }
0x111a   : > { %v1675_v28 = vadd.f32 %v1674_v24, %v1670_v26  ;;  %v2496_v26 = vld [vmem:[%s3162_s12] sm:$0xff]  }
0x111b   : > { %v1665_v29 = vpop.f32.mrf.mxu0 }
0x111c   : > { %v1676_v30 = vadd.f32 %v1675_v28, %v2979_v10  ;;  %v2490_v10 = vld [vmem:[%s3159_s9 + $0x10] sm:$0xff]  }
0x111d   : > { %v2391_v31 = vpop.f32.mrf.mxu0  ;;  %2395 = vmatpush3.bf16.msra.mxu1 %v2490_v10 }
0x111e   : > { %v1677_v32 = vsel %vm628_vm2, %v1676_v30, 0.0  ;;  %2412 = vmatprep.subr.bf16.mxu1 %v2598_v2 }
0x111f   : > { %1678 = vadd.xlane.f32.xlu1 %v1677_v32 }
0x11a8   : > { %v1679_v33 = vpop.xlane.xlu1 %1678 }
0x11a9   : > { %v1680_v34 = vmul.f32 0.03125, %v1679_v33  ;;  %v1881_v33 = vrot.slane %v3037_v23, %v1267_v5 }
0x11ab   : > { %v1681_v35 = vsub.f32 %v1676_v30, %v1680_v34  ;;  %v1876_v30 = vrot.slane %v3037_v23, %v1262_v4  ;;  %v1888_v4 = vld [vmem:[%s3163_s13] sm:$0x1] }
0x11ad   : > { %v1682_v36 = vmul.f32 %v1681_v35, %v1681_v35 }
0x11af   : > { %v1683_v37 = vsel %vm628_vm2, %v1682_v36, 0.0 }
0x11b0   : > { %1684 = vadd.xlane.f32.xlu0 %v1683_v37  ;;  %v2497_v37 = vld [vmem:[%s3164_s14 + $0x8] sm:$0xff]  }
0x1239   : > { %v1685_v40 = vpop.xlane.xlu0 %1684 }
0x123a   : > { %v1686_v42 = vmul.f32 0.03125, %v1685_v40 }
0x123c   : > { %v1687_v43 = vadd.f32 1e-12, %v1686_v42 }
0x123e   : > { %2523 = vrsqrt.f32 %v1687_v43 }
0x124b   : > { %v2524_v46 = vpop.eup %2523 }
0x124c   : > { %v1689_v48 = vmul.f32 %v2524_v46, %v1681_v35 }
0x124e   : > { %v1694_v50 = vmul.f32 %v1693_v44, %v1689_v48 }
0x1250   : > { %v1699_v51 = vadd.f32 %v1698_v49, %v1694_v50 }
0x1252   : > { %v1700_v52 = vpack.c.bf16 %v1699_v51, %v1699_v51 }
0x1254   : > { %2397 = vmatmul.mubr.msk.bf16.vlgmr.msra.gmra.mxu1 %vm628_vm2, %v1700_v52 }
0x1255   : > { %2416 = vmatprep.mubr.msk.bf16.mxu1 %vm2599_vm0, %v2598_v2  ;;  %2413 = vmatpush3.bf16.msra.mxu1 %v2495_v45 }
0x1256   : > { %2414 = vmatprep.subr.bf16.mxu1 %v2598_v2 }
0x1259   : > { %2415 = vmatpush3.bf16.msra.mxu1 %v2496_v26 }
0x125a   : > { %2420 = vmatprep.subr.bf16.mxu1 %v2598_v2 }
0x1314   : > { %v1763_v55 = vpop.f32.mrf.mxu1 }
0x1315   : > { %v1764_v57 = vadd.f32 %v2154_v54, %v1763_v55 }
0x1316   : > { %v2398_v58 = vpop.f32.mrf.mxu1 }
0x1317   : > { %v1770_v59 = vmul.f32 0.044715, %v1764_v57  ;;  %v1769_v7 = vmul.f32 0.5, %v1764_v57 }
0x1318   : > { %v1766_v60 = vpop.f32.mrf.mxu1 }
0x1319   : > { %v1771_v62 = vmul.f32 %v1770_v59, %v1764_v57 }
0x131a   : > { %v2399_v63 = vpop.f32.mrf.mxu1 }
0x131b   : > { %v1772_v0 = vmul.f32 %v1771_v62, %v1764_v57 }
0x131d   : > { %v1773_v1 = vadd.f32 %v1772_v0, %v1764_v57 }
0x131f   : > { %v1774_v3 = vmul.f32 0.7978846, %v1773_v1 }
0x1321   : > { %2525 = vtanh.f32 %v1774_v3 }
0x132e   : > { %v2526_v6 = vpop.eup %2525 }
0x132f   : > { %v1776_v8 = vadd.f32 1.0, %v2526_v6 }
0x1331   : > { %v1777_v9 = vmul.f32 %v1776_v8, %v1769_v7 }
0x1333   : > { %v1778_v47 = vpack.c.bf16 %v1777_v9, %v1777_v9 }
0x1335   : > { %2409 = vmatmul.mubr.msk.bf16.vlgmr.msra.gmra.mxu0 %vm1202_vm6, %v1778_v47 }
0x13f5   : > { %v1853_v12 = vpop.f32.mrf.mxu0 }
0x13f6   : > { %v1854_v14 = vadd.f32 %v1853_v12, %v1791_v11 }
0x13f7   : > { %v2410_v15 = vpop.f32.mrf.mxu0 }
0x13f8   : > { %v1859_v16 = vadd.f32 %v1854_v14, %v1699_v51 }
0x13f9   : > { %v1856_v17 = vpop.f32.mrf.mxu0 }
0x13fa   : > { %v1860_v56 = vsel %vm628_vm2, %v1859_v16, 0.0 }
0x13fb   : > { %1861 = vadd.xlane.f32.xlu1 %v1860_v56  ;;  %v2411_v18 = vpop.f32.mrf.mxu0 }
0x1484   : > { %v1862_v19 = vpop.xlane.xlu1 %1861 }
0x1485   : > { %v1863_v21 = vmul.f32 0.03125, %v1862_v19 }
0x1487   : > { %v1864_v22 = vsub.f32 %v1859_v16, %v1863_v21 }
0x1489   : > { %v1865_v24 = vmul.f32 %v1864_v22, %v1864_v22 }
0x148b   : > { %v1866_v25 = vsel %vm628_vm2, %v1865_v24, 0.0 }
0x148c   : > { %1867 = vadd.xlane.f32.xlu0 %v1866_v25 }
0x1515   : > { %v1868_v27 = vpop.xlane.xlu0 %1867 }
0x1516   : > { %v1869_v28 = vmul.f32 0.03125, %v1868_v27 }
0x1518   : > { %v1870_v29 = vadd.f32 1e-12, %v1869_v28 }
0x151a   : > { %2527 = vrsqrt.f32 %v1870_v29 }
0x1527   : > { %v2528_v31 = vpop.eup %2527 }
0x1528   : > { %v1872_v32 = vmul.f32 %v2528_v31, %v1864_v22 }
0x152a   : > { %v1877_v34 = vmul.f32 %v1876_v30, %v1872_v32 }
0x152c   : > { %v1882_v35 = vadd.f32 %v1881_v33, %v1877_v34 }
0x152e   : > { %v1883_v36 = vpack.c.bf16 %v1882_v35, %v1882_v35 }
0x1530   : > { %2417 = vmatmul.mubr.msk.bf16.vlgmr.msra.gmra.mxu1 %vm628_vm2, %v1883_v36 }
0x1531   : > { %2424 = vmatprep.mubr.msk.bf16.mxu1 %vm2599_vm0, %v2598_v2  ;;  %2421 = vmatpush3.bf16.msra.mxu1 %v2497_v37 }
0x1532   : > { %2422 = vmatprep.subr.bf16.mxu1 %v2598_v2  ;;  %v1950_v2 = vld [vmem:[%s3165_s15] sm:$0x1] }
0x1535   : > { %2423 = vmatpush3.bf16.msra.mxu1 %v2498_v38 }
0x15f0   : > { %v1938_v5 = vpop.f32.mrf.mxu1 }
0x15f1   : > { %v1939_v23 = vadd.f32 %v1938_v5, %v1888_v4 }
0x15f2   : > { %v2418_v39 = vpop.f32.mrf.mxu1 }
0x15f3   : > { %2529 = vtanh.f32 %v1939_v23 }
0x15f4   : > { %v1941_v10 = vpop.f32.mrf.mxu1 }
0x15f6   : > { %v2419_v40 = vpop.f32.mrf.mxu1 }
0x1600   : > { %v2530_v42 = vpop.eup %2529 }
0x1601   : > { %v1945_v43 = vpack.c.bf16 %v2530_v42, %v2530_v42 }
0x1603   : > { %2425 = vmatmul.mubr.msk.bf16.vlgmr.msra.gmra.mxu1 %vm628_vm2, %v1945_v43 }
0x16c3   : > { %v2000_v44 = vpop.f32.mrf.mxu1 }
0x16c4   : > { %v2001_v46 = vadd.f32 %v2000_v44, %v1950_v2 }
0x16c5   : > { %v2426_v48 = vpop.f32.mrf.mxu1 }
0x16c6   : > { %v2007_v49 = vsel %vm2006_vm7, %v2001_v46, -1e+30 }
0x16c7   : > { %v2003_v50 = vpop.f32.mrf.mxu1  ;;  %v2009_v51 = vsel %vm2008_vm8, %v2007_v49, -inf }
0x16c8   : > { %2010 = vmax.xlane.f32.xlu1 %v2009_v51 }
0x16c9   : > { %v2427_v52 = vpop.f32.mrf.mxu1 }
0x1751   : > { %v2011_v61 = vpop.xlane.xlu1 %2010 }
0x1752   : > { %v2012_v41 = vsub.f32 %v2007_v49, %v2011_v61 }
0x1754   : > { %v2013_v13 = vmul.f32 1.442695, %v2012_v41 }
0x1756   : > { %2531 = vpow2.f32 %v2013_v13 }
0x1763   : > { %v2532_v53 = vpop.eup %2531 }
0x1764   : > { %v2015_v54 = vsel %vm2008_vm8, %v2532_v53, 0.0 }
0x1765   : > { %2016 = vadd.xlane.f32.xlu0 %v2015_v54 }
0x17ee   : > { %v2017_v55 = vpop.xlane.xlu0 %2016 }
0x17ef   : > { %2533 = vrcp.f32 %v2017_v55 }
0x17fc   : > { %v2534_v20 = vpop.eup %2533 }
0x17fd   : > { %v2019_v57 = vmul.f32 %v2534_v20, %v2532_v53 }
0x17ff   : > { %2020 = vst [vmem:[%s522_s30] sm:$0x1] %v2019_v57 }
0x1800   : > { %2548 = shalt.err (!%p2545_p3)
}
0x1801   : > { %s2549_s18 = scalar_lea.hbm %s2032_s21, 16  ;;  %s2553_s30 = scalar_lea.hbm %s3166_s16, 32 }
0x1802   : > { %p2550_p4 = scmp.ne.s32.totalorder %s2032_s21, %s2549_s18  ;;  %p2554_p9 = scmp.lt.s32.totalorder %s2032_s21, %s3166_s16 }
0x1803   : > { %p2555_p10 = scmp.lt.s32.totalorder %s2553_s30, %s2549_s18 }
0x1804   : > { %p2551_p7 = pnand %p2550_p4, %p2728_p5 }
0x1805   : > { %p2556_p11 = por %p2555_p10, %p2554_p9 }
0x1806   : > { %p2552_p8 = pneg %p2551_p7 }
0x1808   : > { %p2557_p12 = pnand %p2556_p11, %p2552_p8 }
0x180a   : > { %2560 = shalt.err (!%p2557_p12)
}
0x180b   : > { %2428 = dma.vmem_to_hbm [thread:$0]  (%p2728_p5), %s2035_s27, 16, %s2032_s21, %s2022_s17  }
0x180c PF: > { %s3183_s28 = sld [smem:[#allocation7_spill]] }
0x180d   : > { %s3184_s23 = sld [smem:[#allocation5_spill]] }
0x1812   : > { %p2434_p13 = scmp.ge.s32.totalorder %s3183_s28, 2 }
0x1813   : > { %s2046_s25 = sand.u32 1, %s3184_s23  }
0x1814   : > { %p2431_p0 = pnand %p2434_p13, %p2732_p6  ;;  %s2047_s19 = scalar_lea.sflag [#allocation3], %s2046_s25 }
0x1816   : > { %p2432_p1 = pneg %p2431_p0 }
0x1818   : > { %2578 = dma.done.wait (%p2432_p1), %s2047_s19, 16  }
0x1819   : > { %2580 = vsyncadd (%p2432_p1), %s2047_s19, 4294967280  ;;  %s3186_s24 = sld [smem:[#allocation8_spill]]  ;;  %s3189_s21 = smov %s2587_s22 }
0x181a   : > { %s3187_s18 = sld [smem:[#allocation6_spill]] }
0x181b   : > { %s3188_s23 = sld [smem:[#allocation9_spill]] }
0x181f   : > { %p26_p2 = scmp.ge.s32.totalorder %s3186_s24, 4  }
0x1820   : > { %s3190_s22 = smov %s3187_s18 }
0x1821   :  { %28 = sbr.rel (!%p26_p2) target bundleno = 5 (0x5), region = 129 }
0x1826   :  { %2051 = vsyncpa [#allocation3], 1 }
0x1827   :  { %2053 = vsyncpa [#allocation3 + $0x1], 1 }

</bundles_post_ra>
